<compile_context>
chip_gen: v5e
topology: v5e:2x2
jax: 0.10.0
libtpu: 0.0.40
codegen_flags: <defaults>
</compile_context>

<pallas_src>
import functools
import math

import jax
import jax.numpy as jnp
import numpy as np
from jax import lax
from jax.experimental import pallas as pl
from jax.experimental.pallas import tpu as pltpu


def _round_up(x: int, m: int) -> int:
    return (x + m - 1) // m * m


def _physical_vmem_bytes() -> int:
    """Per-core VMEM capacity; conservative 64 MiB (v7x) fallback."""
    try:
        return int(pltpu.get_tpu_info().vmem_capacity_bytes)
    except Exception:  # not on TPU / API mismatch
        return 64 * 2 ** 20


def _mha_kernel(x_ref, wq_ref, bq_ref, wkv_ref, bkv_ref, wo_ref, bo_ref,
                gamma_ref, beta_ref, o_ref, kv_scr, ctx_scr,
                *, num_heads: int, d_k: int, tile_l: int, seq_len: int,
                eps: float, matmul_dtype, exp_dtype):
    D = num_heads * d_k
    qi = pl.program_id(1)
    L_pad = kv_scr.shape[2]

    # ---- K/V projection: one fused (L, D) @ (D, 2D) MXU matmul per batch
    # element (qi == 0), cached head-major in matmul_dtype for all query tiles.
    @pl.when(qi == 0)
    def _():
        xf = x_ref[0].astype(matmul_dtype)                              # (L, D)
        kv = (jnp.dot(xf, wkv_ref[...], preferred_element_type=jnp.float32)
              + bkv_ref[...])                                           # (L, 2D) f32
        for h in range(num_heads):
            lo = h * d_k
            kv_scr[0, h] = kv[:, lo:lo + d_k].astype(matmul_dtype)       # K_h
            kv_scr[1, h] = kv[:, D + lo:D + lo + d_k].astype(matmul_dtype)  # V_h

    # ---- Per-tile Q projection (scale 1/sqrt(d_k) folded into Wq/bq already).
    q_start = pl.multiple_of(qi * tile_l, tile_l)
    x_tile = x_ref[0, pl.ds(q_start, tile_l), :]                        # (tile_l, D) f32
    q = (jnp.dot(x_tile.astype(matmul_dtype), wq_ref[...],
                 preferred_element_type=jnp.float32) + bq_ref[...])     # (tile_l, D) f32

    need_mask = seq_len < L_pad
    if need_mask:
        key_idx = lax.broadcasted_iota(jnp.int32, (tile_l, L_pad), 1)

    for h in range(num_heads):                                          # static unroll
        lo = h * d_k
        qh = q[:, lo:lo + d_k].astype(matmul_dtype)                     # (tile_l, d_k)
        kh = kv_scr[0, h]                                               # (L_pad, d_k)
        vh = kv_scr[1, h]                                               # (L_pad, d_k)

        # q @ k^T as an NT dot_general (contract last axes) — no explicit kh.T.
        s = lax.dot_general(qh, kh, (((1,), (1,)), ((), ())),
                            preferred_element_type=jnp.float32)         # (tile_l, L_pad)
        if need_mask:                                                   # padded keys
            s = jnp.where(key_idx < seq_len, s, jnp.float32(-1e30))
        m = jnp.max(s, axis=-1, keepdims=True)
        # Numerator exp in exp_dtype (bf16 on v6e/v7x bf16 mode); row-sum in f32.
        e = jnp.exp((s - m).astype(exp_dtype))
        denom = jnp.sum(e, axis=-1, keepdims=True, dtype=jnp.float32)   # (tile_l, 1)
        ctx_h = jnp.dot(e.astype(matmul_dtype), vh,
                        preferred_element_type=jnp.float32)             # (tile_l, d_k)
        # Deferred softmax normalization on the small (tile_l, d_k) context.
        ctx_scr[:, lo:lo + d_k] = (
            ctx_h * pl.reciprocal(denom, approx=True)).astype(matmul_dtype)

    # ---- Output projection (single lane-dense (tile_l, D) @ (D, D) matmul),
    # residual add and LayerNorm, all in f32.
    out = (jnp.dot(ctx_scr[...], wo_ref[...],
                   preferred_element_type=jnp.float32) + bo_ref[...])
    y = out + x_tile
    mean = jnp.mean(y, axis=-1, keepdims=True)
    var = jnp.mean(jnp.square(y - mean), axis=-1, keepdims=True)
    y_norm = (y - mean) * lax.rsqrt(var + eps)
    o_ref[0] = gamma_ref[...] * y_norm + beta_ref[...]


def prepare_params(params, *, num_heads: int, matmul_dtype=jnp.bfloat16):
    """One-time parameter fusion/cast (do at load time, not per forward call)."""
    D = params["wq"].shape[0]
    d_k = D // num_heads
    scale = 1.0 / math.sqrt(d_k)
    return {
        # 1/sqrt(d_k) folded into the Q projection weights/bias.
        "wq": (params["wq"] * scale).astype(matmul_dtype),              # (D, D)
        "bq": (params["bq"] * scale).astype(jnp.float32),               # (1, D)
        "wkv": jnp.concatenate([params["wk"], params["wv"]],
                               axis=1).astype(matmul_dtype),            # (D, 2D)
        "bkv": jnp.concatenate([params["bk"], params["bv"]],
                               axis=1).astype(jnp.float32),             # (1, 2D)
        "wo": params["wo"].astype(matmul_dtype),                        # (D, D)
        "bo": params["bo"].astype(jnp.float32),
        "gamma": params["gamma"].astype(jnp.float32),
        "beta": params["beta"].astype(jnp.float32),
    }


def projection_layer(x, prepared, *, num_heads: int, eps: float = 1e-5,
                     max_q_tile: int = 256, exp_dtype=None):
    """x: (B, L, D) float32 -> (B, L, D) float32."""
    B, L, D = x.shape
    assert D % num_heads == 0
    d_k = D // num_heads
    matmul_dtype = prepared["wq"].dtype
    if exp_dtype is None:
        # bf16 exp uses the bf16-capable EUP on v6e/v7x; pass f32 on v5e.
        exp_dtype = jnp.bfloat16 if matmul_dtype == jnp.bfloat16 else jnp.float32

    # cdiv-based query tiling; pad L and mask padded keys in-kernel.
    tile_l = min(_round_up(max_q_tile, 8), _round_up(L, 8))
    n_q = int(pl.cdiv(L, tile_l))
    L_pad = n_q * tile_l
    x_in = jnp.pad(x, ((0, 0), (0, L_pad - L), (0, 0))) if L_pad != L else x

    kernel = functools.partial(
        _mha_kernel, num_heads=num_heads, d_k=d_k, tile_l=tile_l, seq_len=L,
        eps=eps, matmul_dtype=matmul_dtype, exp_dtype=exp_dtype)

    # VMEM budget (clamped to ~90% of physical VMEM of this generation).
    wbytes = jnp.dtype(matmul_dtype).itemsize
    dk_lanes = _round_up(d_k, 128)
    est = int(
        (4 * D * D + 8 * D) * wbytes            # single-buffered weights/biases
        + 2 * L_pad * D * 4                     # x block (double buffered)
        + 2 * tile_l * D * 4                    # out block (double buffered)
        + 2 * num_heads * L_pad * dk_lanes * wbytes   # head-major K/V scratch
        + tile_l * _round_up(D, 128) * wbytes   # ctx scratch
        + L_pad * 2 * D * 4                     # KV projection temporary
        + 4 * tile_l * _round_up(L_pad, 128) * 4  # score / exp temporaries
        + 2 * tile_l * D * 4)                   # misc per-tile temporaries
    phys = _physical_vmem_bytes()
    vmem_limit = min(int(0.9 * phys), max(32 * 2 ** 20, int(est * 1.5)))

    def _run(single_buffer_weights: bool):
        const_kw = ({"pipeline_mode": pl.Buffered(1)}
                    if single_buffer_weights else {})

        def const_spec(shape):  # constant index_map -> fetched once
            nd = len(shape)
            return pl.BlockSpec(shape, lambda b, qi, _n=nd: (0,) * _n, **const_kw)

        in_specs = [
            pl.BlockSpec((1, L_pad, D), lambda b, qi: (b, 0, 0)),  # x (per-batch resident)
            const_spec((D, D)),          # Wq (pre-scaled)
            const_spec((1, D)),          # bq (pre-scaled)
            const_spec((D, 2 * D)),      # Wkv
            const_spec((1, 2 * D)),      # bkv
            const_spec((D, D)),          # Wo
            const_spec((1, D)),          # bo
            const_spec((1, D)),          # gamma
            const_spec((1, D)),          # beta
        ]
        return pl.pallas_call(
            kernel,
            out_shape=jax.ShapeDtypeStruct((B, L_pad, D), jnp.float32),
            grid_spec=pltpu.PrefetchScalarGridSpec(
                num_scalar_prefetch=0,
                grid=(B, n_q),
                in_specs=in_specs,
                out_specs=pl.BlockSpec((1, tile_l, D), lambda b, qi: (b, qi, 0)),
                scratch_shapes=[
                    # Head-major cached K/V (lane-clean per-head reads; note the
                    # d_k < 128 lane padding trade-off for tiny heads).
                    pltpu.VMEM((2, num_heads, L_pad, d_k), matmul_dtype),
                    # Per-tile context (head concat) feeding one Wo matmul.
                    pltpu.VMEM((tile_l, D), matmul_dtype),
                ],
            ),
            compiler_params=pltpu.CompilerParams(
                # Batch axis -> megacore parallel.  The q-tile axis stays
                # "arbitrary" (K/V scratch filled at qi == 0, reused after).
                dimension_semantics=("parallel", "arbitrary"),
                vmem_limit_bytes=vmem_limit,
            ),
        )(x_in, prepared["wq"], prepared["bq"], prepared["wkv"], prepared["bkv"],
          prepared["wo"], prepared["bo"], prepared["gamma"], prepared["beta"])

    try:
        out = _run(True)
    except Exception:
        # Fallback if pipeline_mode=pl.Buffered(1) is unsupported on this
        # jax/Mosaic version (default double-buffering, identical semantics).
        out = _run(False)
    return out[:, :L, :] if L_pad != L else out


def _reference(x, params, num_heads, eps=1e-5):
    """Pure-JAX reference of the same forward pass."""
    B, L, D = x.shape
    d_k = D // num_heads
    q = x @ params["wq"] + params["bq"]
    k = x @ params["wk"] + params["bk"]
    v = x @ params["wv"] + params["bv"]

    def split(t):  # (B, L, D) -> (B, H, L, d_k)
        return t.reshape(B, L, num_heads, d_k).transpose(0, 2, 1, 3)

    qh, kh, vh = split(q), split(k), split(v)
    scores = jnp.einsum("bhqd,bhkd->bhqk", qh, kh) / math.sqrt(d_k)
    attn = jax.nn.softmax(scores, axis=-1)
    ctx = jnp.einsum("bhqk,bhkd->bhqd", attn, vh)
    ctx = ctx.transpose(0, 2, 1, 3).reshape(B, L, D)
    out = ctx @ params["wo"] + params["bo"]
    y = out + x
    mean = jnp.mean(y, axis=-1, keepdims=True)
    var = jnp.mean((y - mean) ** 2, axis=-1, keepdims=True)
    return params["gamma"] * ((y - mean) / jnp.sqrt(var + eps)) + params["beta"]


def _init_params(key, D):
    ks = jax.random.split(key, 8)
    s = 1.0 / math.sqrt(D)
    return {
        "wq": jax.random.uniform(ks[0], (D, D), jnp.float32, -s, s),
        "bq": jax.random.uniform(ks[1], (1, D), jnp.float32, -s, s),
        "wk": jax.random.uniform(ks[2], (D, D), jnp.float32, -s, s),
        "bk": jax.random.uniform(ks[3], (1, D), jnp.float32, -s, s),
        "wv": jax.random.uniform(ks[4], (D, D), jnp.float32, -s, s),
        "bv": jax.random.uniform(ks[5], (1, D), jnp.float32, -s, s),
        "wo": jax.random.uniform(ks[6], (D, D), jnp.float32, -s, s),
        "bo": jax.random.uniform(ks[7], (1, D), jnp.float32, -s, s),
        "gamma": jnp.ones((1, D), jnp.float32),
        "beta": jnp.zeros((1, D), jnp.float32),
    }


if __name__ == "__main__":
    B, L, D, H = 2, 8, 32, 4   # batch, seq, n_feature, num_heads

    key = jax.random.PRNGKey(0)
    k_x, k_p, k_x2 = jax.random.split(key, 3)
    x = jax.random.normal(k_x, (B, L, D), jnp.float32)
    params = _init_params(k_p, D)
    ref = _reference(x, params, H)

    # 1) Default bf16 MXU-input path (f32 accumulation; softmax/LN stats in f32).
    prep_bf16 = prepare_params(params, num_heads=H)                    # bf16 default
    out_bf16 = jax.block_until_ready(projection_layer(x, prep_bf16, num_heads=H))
    np.testing.assert_allclose(np.asarray(out_bf16), np.asarray(ref),
                               rtol=1e-1, atol=1e-1)

    # 2) f32 MXU path for tighter numerical parity.
    prep_f32 = prepare_params(params, num_heads=H, matmul_dtype=jnp.float32)
    out_f32 = jax.block_until_ready(projection_layer(x, prep_f32, num_heads=H))
    np.testing.assert_allclose(np.asarray(out_f32), np.asarray(ref),
                               rtol=2e-2, atol=2e-2)

    # 3) Ragged L (no nice divisor): exercises cdiv tiling, key-padding mask,
    #    multi-tile cached-KV path and output un-padding.
    x2 = jax.random.normal(k_x2, (B, 20, D), jnp.float32)
    ref2 = _reference(x2, params, H)
    out2 = jax.block_until_ready(
        projection_layer(x2, prep_f32, num_heads=H, max_q_tile=16))
    np.testing.assert_allclose(np.asarray(out2), np.asarray(ref2),
                               rtol=2e-2, atol=2e-2)

    print("KERNEL_OK")
</pallas_src>

<mosaic_0001>
module attributes {stable_mosaic.version = 11 : i64} {
  func.func @_mha_kernel(%arg0: i32, %arg1: i32, %arg2: memref<1x8x32xf32, #tpu.memory_space<vmem>>, %arg3: memref<32x32xbf16, #tpu.memory_space<vmem>>, %arg4: memref<1x32xf32, #tpu.memory_space<vmem>>, %arg5: memref<32x64xbf16, #tpu.memory_space<vmem>>, %arg6: memref<1x64xf32, #tpu.memory_space<vmem>>, %arg7: memref<32x32xbf16, #tpu.memory_space<vmem>>, %arg8: memref<1x32xf32, #tpu.memory_space<vmem>>, %arg9: memref<1x32xf32, #tpu.memory_space<vmem>>, %arg10: memref<1x32xf32, #tpu.memory_space<vmem>>, %arg11: memref<1x8x32xf32, #tpu.memory_space<vmem>>, %arg12: memref<2x4x8x8xbf16, #tpu.memory_space<vmem>>, %arg13: memref<8x32xbf16, #tpu.memory_space<vmem>>) attributes {dimension_semantics = [#tpu.dimension_semantics<parallel>, #tpu.dimension_semantics<arbitrary>], iteration_bounds = array<i64: 2, 1>, scalar_prefetch = 0 : i64, scratch_operands = 2 : i64, tpu.core_type = #tpu.core_type<tc>, window_params = [{transform_indices = @transform_0, window_bounds = array<i64: 1, 8, 32>}, {pipeline_mode = #tpu.pipeline_mode<synchronous>, transform_indices = @transform_1, window_bounds = array<i64: 32, 32>}, {pipeline_mode = #tpu.pipeline_mode<synchronous>, transform_indices = @transform_2, window_bounds = array<i64: 1, 32>}, {pipeline_mode = #tpu.pipeline_mode<synchronous>, transform_indices = @transform_3, window_bounds = array<i64: 32, 64>}, {pipeline_mode = #tpu.pipeline_mode<synchronous>, transform_indices = @transform_4, window_bounds = array<i64: 1, 64>}, {pipeline_mode = #tpu.pipeline_mode<synchronous>, transform_indices = @transform_5, window_bounds = array<i64: 32, 32>}, {pipeline_mode = #tpu.pipeline_mode<synchronous>, transform_indices = @transform_6, window_bounds = array<i64: 1, 32>}, {pipeline_mode = #tpu.pipeline_mode<synchronous>, transform_indices = @transform_7, window_bounds = array<i64: 1, 32>}, {pipeline_mode = #tpu.pipeline_mode<synchronous>, transform_indices = @transform_8, window_bounds = array<i64: 1, 32>}, {transform_indices = @transform_9, window_bounds = array<i64: 1, 8, 32>}]} {
    %c0_i32 = arith.constant 0 : i32
    %0 = arith.cmpi eq, %arg1, %c0_i32 : i32
    %1 = arith.extui %0 : i1 to i32
    %c0_i32_0 = arith.constant 0 : i32
    %2 = arith.cmpi ne, %1, %c0_i32_0 : i32
    scf.if %2 {
      %c0_75 = arith.constant 0 : index
      %c0_76 = arith.constant 0 : index
      %c0_77 = arith.constant 0 : index
      %136 = vector.load %arg2[%c0_75, %c0_76, %c0_77] : memref<1x8x32xf32, #tpu.memory_space<vmem>>, vector<1x8x32xf32>
      %137 = vector.shape_cast %136 : vector<1x8x32xf32> to vector<8x32xf32>
      %138 = arith.truncf %137 : vector<8x32xf32> to vector<8x32xbf16>
      %c0_78 = arith.constant 0 : index
      %c0_79 = arith.constant 0 : index
      %139 = vector.load %arg5[%c0_78, %c0_79] : memref<32x64xbf16, #tpu.memory_space<vmem>>, vector<32x64xbf16>
      %cst_80 = arith.constant dense<0.000000e+00> : vector<8x64xf32>
      %140 = tpu.matmul %138, %139, %cst_80 {dimension_numbers = #tpu.dot_dimension_numbers<[1], [0], [0], [1], [0, 0, 1, 1], [], []>} : vector<8x32xbf16>, vector<32x64xbf16>, vector<8x64xf32> -> vector<8x64xf32>
      %c0_81 = arith.constant 0 : index
      %c0_82 = arith.constant 0 : index
      %141 = vector.load %arg6[%c0_81, %c0_82] : memref<1x64xf32, #tpu.memory_space<vmem>>, vector<1x64xf32>
      %142 = vector.broadcast %141 : vector<1x64xf32> to vector<8x64xf32>
      %143 = arith.addf %140, %142 : vector<8x64xf32>
      %144 = vector.extract_strided_slice %143 {offsets = [0, 0], sizes = [8, 8], strides = [1, 1]} : vector<8x64xf32> to vector<8x8xf32>
      %145 = arith.truncf %144 : vector<8x8xf32> to vector<8x8xbf16>
      %c0_83 = arith.constant 0 : index
      %c0_84 = arith.constant 0 : index
      %c0_85 = arith.constant 0 : index
      %c0_86 = arith.constant 0 : index
      %146 = vector.load %arg12[%c0_83, %c0_84, %c0_85, %c0_86] : memref<2x4x8x8xbf16, #tpu.memory_space<vmem>>, vector<1x1x8x8xbf16>
      %147 = vector.shape_cast %146 : vector<1x1x8x8xbf16> to vector<8x8xbf16>
      %148 = vector.shape_cast %145 : vector<8x8xbf16> to vector<1x1x8x8xbf16>
      tpu.vector_store %arg12[%c0_83, %c0_84, %c0_85, %c0_86], %148 {strides = array<i32>} : memref<2x4x8x8xbf16, #tpu.memory_space<vmem>>, vector<1x1x8x8xbf16>,
      %149 = vector.extract_strided_slice %143 {offsets = [0, 32], sizes = [8, 8], strides = [1, 1]} : vector<8x64xf32> to vector<8x8xf32>
      %150 = arith.truncf %149 : vector<8x8xf32> to vector<8x8xbf16>
      %c1_87 = arith.constant 1 : index
      %c0_88 = arith.constant 0 : index
      %c0_89 = arith.constant 0 : index
      %c0_90 = arith.constant 0 : index
      %151 = vector.load %arg12[%c1_87, %c0_88, %c0_89, %c0_90] : memref<2x4x8x8xbf16, #tpu.memory_space<vmem>>, vector<1x1x8x8xbf16>
      %152 = vector.shape_cast %151 : vector<1x1x8x8xbf16> to vector<8x8xbf16>
      %153 = vector.shape_cast %150 : vector<8x8xbf16> to vector<1x1x8x8xbf16>
      tpu.vector_store %arg12[%c1_87, %c0_88, %c0_89, %c0_90], %153 {strides = array<i32>} : memref<2x4x8x8xbf16, #tpu.memory_space<vmem>>, vector<1x1x8x8xbf16>,
      %154 = vector.extract_strided_slice %143 {offsets = [0, 8], sizes = [8, 8], strides = [1, 1]} : vector<8x64xf32> to vector<8x8xf32>
      %155 = arith.truncf %154 : vector<8x8xf32> to vector<8x8xbf16>
      %c0_91 = arith.constant 0 : index
      %c1_92 = arith.constant 1 : index
      %c0_93 = arith.constant 0 : index
      %c0_94 = arith.constant 0 : index
      %156 = vector.load %arg12[%c0_91, %c1_92, %c0_93, %c0_94] : memref<2x4x8x8xbf16, #tpu.memory_space<vmem>>, vector<1x1x8x8xbf16>
      %157 = vector.shape_cast %156 : vector<1x1x8x8xbf16> to vector<8x8xbf16>
      %158 = vector.shape_cast %155 : vector<8x8xbf16> to vector<1x1x8x8xbf16>
      tpu.vector_store %arg12[%c0_91, %c1_92, %c0_93, %c0_94], %158 {strides = array<i32>} : memref<2x4x8x8xbf16, #tpu.memory_space<vmem>>, vector<1x1x8x8xbf16>,
      %159 = vector.extract_strided_slice %143 {offsets = [0, 40], sizes = [8, 8], strides = [1, 1]} : vector<8x64xf32> to vector<8x8xf32>
      %160 = arith.truncf %159 : vector<8x8xf32> to vector<8x8xbf16>
      %c1_95 = arith.constant 1 : index
      %c1_96 = arith.constant 1 : index
      %c0_97 = arith.constant 0 : index
      %c0_98 = arith.constant 0 : index
      %161 = vector.load %arg12[%c1_95, %c1_96, %c0_97, %c0_98] : memref<2x4x8x8xbf16, #tpu.memory_space<vmem>>, vector<1x1x8x8xbf16>
      %162 = vector.shape_cast %161 : vector<1x1x8x8xbf16> to vector<8x8xbf16>
      %163 = vector.shape_cast %160 : vector<8x8xbf16> to vector<1x1x8x8xbf16>
      tpu.vector_store %arg12[%c1_95, %c1_96, %c0_97, %c0_98], %163 {strides = array<i32>} : memref<2x4x8x8xbf16, #tpu.memory_space<vmem>>, vector<1x1x8x8xbf16>,
      %164 = vector.extract_strided_slice %143 {offsets = [0, 16], sizes = [8, 8], strides = [1, 1]} : vector<8x64xf32> to vector<8x8xf32>
      %165 = arith.truncf %164 : vector<8x8xf32> to vector<8x8xbf16>
      %c0_99 = arith.constant 0 : index
      %c2_100 = arith.constant 2 : index
      %c0_101 = arith.constant 0 : index
      %c0_102 = arith.constant 0 : index
      %166 = vector.load %arg12[%c0_99, %c2_100, %c0_101, %c0_102] : memref<2x4x8x8xbf16, #tpu.memory_space<vmem>>, vector<1x1x8x8xbf16>
      %167 = vector.shape_cast %166 : vector<1x1x8x8xbf16> to vector<8x8xbf16>
      %168 = vector.shape_cast %165 : vector<8x8xbf16> to vector<1x1x8x8xbf16>
      tpu.vector_store %arg12[%c0_99, %c2_100, %c0_101, %c0_102], %168 {strides = array<i32>} : memref<2x4x8x8xbf16, #tpu.memory_space<vmem>>, vector<1x1x8x8xbf16>,
      %169 = vector.extract_strided_slice %143 {offsets = [0, 48], sizes = [8, 8], strides = [1, 1]} : vector<8x64xf32> to vector<8x8xf32>
      %170 = arith.truncf %169 : vector<8x8xf32> to vector<8x8xbf16>
      %c1_103 = arith.constant 1 : index
      %c2_104 = arith.constant 2 : index
      %c0_105 = arith.constant 0 : index
      %c0_106 = arith.constant 0 : index
      %171 = vector.load %arg12[%c1_103, %c2_104, %c0_105, %c0_106] : memref<2x4x8x8xbf16, #tpu.memory_space<vmem>>, vector<1x1x8x8xbf16>
      %172 = vector.shape_cast %171 : vector<1x1x8x8xbf16> to vector<8x8xbf16>
      %173 = vector.shape_cast %170 : vector<8x8xbf16> to vector<1x1x8x8xbf16>
      tpu.vector_store %arg12[%c1_103, %c2_104, %c0_105, %c0_106], %173 {strides = array<i32>} : memref<2x4x8x8xbf16, #tpu.memory_space<vmem>>, vector<1x1x8x8xbf16>,
      %174 = vector.extract_strided_slice %143 {offsets = [0, 24], sizes = [8, 8], strides = [1, 1]} : vector<8x64xf32> to vector<8x8xf32>
      %175 = arith.truncf %174 : vector<8x8xf32> to vector<8x8xbf16>
      %c0_107 = arith.constant 0 : index
      %c3_108 = arith.constant 3 : index
      %c0_109 = arith.constant 0 : index
      %c0_110 = arith.constant 0 : index
      %176 = vector.load %arg12[%c0_107, %c3_108, %c0_109, %c0_110] : memref<2x4x8x8xbf16, #tpu.memory_space<vmem>>, vector<1x1x8x8xbf16>
      %177 = vector.shape_cast %176 : vector<1x1x8x8xbf16> to vector<8x8xbf16>
      %178 = vector.shape_cast %175 : vector<8x8xbf16> to vector<1x1x8x8xbf16>
      tpu.vector_store %arg12[%c0_107, %c3_108, %c0_109, %c0_110], %178 {strides = array<i32>} : memref<2x4x8x8xbf16, #tpu.memory_space<vmem>>, vector<1x1x8x8xbf16>,
      %179 = vector.extract_strided_slice %143 {offsets = [0, 56], sizes = [8, 8], strides = [1, 1]} : vector<8x64xf32> to vector<8x8xf32>
      %180 = arith.truncf %179 : vector<8x8xf32> to vector<8x8xbf16>
      %c1_111 = arith.constant 1 : index
      %c3_112 = arith.constant 3 : index
      %c0_113 = arith.constant 0 : index
      %c0_114 = arith.constant 0 : index
      %181 = vector.load %arg12[%c1_111, %c3_112, %c0_113, %c0_114] : memref<2x4x8x8xbf16, #tpu.memory_space<vmem>>, vector<1x1x8x8xbf16>
      %182 = vector.shape_cast %181 : vector<1x1x8x8xbf16> to vector<8x8xbf16>
      %183 = vector.shape_cast %180 : vector<8x8xbf16> to vector<1x1x8x8xbf16>
      tpu.vector_store %arg12[%c1_111, %c3_112, %c0_113, %c0_114], %183 {strides = array<i32>} : memref<2x4x8x8xbf16, #tpu.memory_space<vmem>>, vector<1x1x8x8xbf16>,
    } else {
    }
    %c8_i32 = arith.constant 8 : i32
    %3 = arith.muli %arg1, %c8_i32 : i32
    %4 = tpu.assume_multiple %3, 8 : i32
    %c0 = arith.constant 0 : index
    %5 = arith.index_cast %4 : i32 to index
    %c0_1 = arith.constant 0 : index
    %6 = vector.load %arg2[%c0, %5, %c0_1] : memref<1x8x32xf32, #tpu.memory_space<vmem>>, vector<1x8x32xf32>
    %7 = vector.shape_cast %6 : vector<1x8x32xf32> to vector<8x32xf32>
    %8 = arith.truncf %7 : vector<8x32xf32> to vector<8x32xbf16>
    %c0_2 = arith.constant 0 : index
    %c0_3 = arith.constant 0 : index
    %9 = vector.load %arg3[%c0_2, %c0_3] : memref<32x32xbf16, #tpu.memory_space<vmem>>, vector<32x32xbf16>
    %cst = arith.constant dense<0.000000e+00> : vector<8x32xf32>
    %10 = tpu.matmul %8, %9, %cst {dimension_numbers = #tpu.dot_dimension_numbers<[1], [0], [0], [1], [0, 0, 1, 1], [], []>} : vector<8x32xbf16>, vector<32x32xbf16>, vector<8x32xf32> -> vector<8x32xf32>
    %c0_4 = arith.constant 0 : index
    %c0_5 = arith.constant 0 : index
    %11 = vector.load %arg4[%c0_4, %c0_5] : memref<1x32xf32, #tpu.memory_space<vmem>>, vector<1x32xf32>
    %12 = vector.broadcast %11 : vector<1x32xf32> to vector<8x32xf32>
    %13 = arith.addf %10, %12 : vector<8x32xf32>
    %14 = vector.extract_strided_slice %13 {offsets = [0, 0], sizes = [8, 8], strides = [1, 1]} : vector<8x32xf32> to vector<8x8xf32>
    %15 = arith.truncf %14 : vector<8x8xf32> to vector<8x8xbf16>
    %c0_6 = arith.constant 0 : index
    %c0_7 = arith.constant 0 : index
    %c0_8 = arith.constant 0 : index
    %c0_9 = arith.constant 0 : index
    %16 = vector.load %arg12[%c0_6, %c0_7, %c0_8, %c0_9] : memref<2x4x8x8xbf16, #tpu.memory_space<vmem>>, vector<1x1x8x8xbf16>
    %17 = vector.shape_cast %16 : vector<1x1x8x8xbf16> to vector<8x8xbf16>
    %c1 = arith.constant 1 : index
    %c0_10 = arith.constant 0 : index
    %c0_11 = arith.constant 0 : index
    %c0_12 = arith.constant 0 : index
    %18 = vector.load %arg12[%c1, %c0_10, %c0_11, %c0_12] : memref<2x4x8x8xbf16, #tpu.memory_space<vmem>>, vector<1x1x8x8xbf16>
    %19 = vector.shape_cast %18 : vector<1x1x8x8xbf16> to vector<8x8xbf16>
    %cst_13 = arith.constant dense<0.000000e+00> : vector<8x8xf32>
    %20 = tpu.matmul %15, %17, %cst_13 {dimension_numbers = #tpu.dot_dimension_numbers<[1], [1], [0], [0], [0, 0, 1, 0], [], []>} : vector<8x8xbf16>, vector<8x8xbf16>, vector<8x8xf32> -> vector<8x8xf32>
    %cst_14 = arith.constant dense<0xFF800000> : vector<8xf32>
    %21 = vector.multi_reduction <maximumf>, %20, %cst_14 [1] : vector<8x8xf32> to vector<8xf32>
    %22 = vector.shape_cast %21 : vector<8xf32> to vector<8x1xf32>
    %23 = vector.broadcast %22 : vector<8x1xf32> to vector<8x8xf32>
    %24 = arith.subf %20, %23 : vector<8x8xf32>
    %25 = arith.truncf %24 : vector<8x8xf32> to vector<8x8xbf16>
    %26 = math.exp %25 : vector<8x8xbf16>
    %27 = arith.extf %26 : vector<8x8xbf16> to vector<8x8xf32>
    %cst_15 = arith.constant dense<0.000000e+00> : vector<8xf32>
    %28 = vector.multi_reduction <add>, %27, %cst_15 [1] : vector<8x8xf32> to vector<8xf32>
    %29 = vector.shape_cast %28 : vector<8xf32> to vector<8x1xf32>
    %cst_16 = arith.constant dense<0.000000e+00> : vector<8x8xf32>
    %30 = tpu.matmul %26, %19, %cst_16 {dimension_numbers = #tpu.dot_dimension_numbers<[1], [0], [0], [1], [0, 0, 1, 1], [], []>} : vector<8x8xbf16>, vector<8x8xbf16>, vector<8x8xf32> -> vector<8x8xf32>
    %31 = tpu.reciprocal %29 {approx = true} : vector<8x1xf32> -> vector<8x1xf32>
    %32 = vector.broadcast %31 : vector<8x1xf32> to vector<8x8xf32>
    %33 = arith.mulf %30, %32 : vector<8x8xf32>
    %34 = arith.truncf %33 : vector<8x8xf32> to vector<8x8xbf16>
    %c0_17 = arith.constant 0 : index
    %c0_18 = arith.constant 0 : index
    %35 = vector.load %arg13[%c0_17, %c0_18] : memref<8x32xbf16, #tpu.memory_space<vmem>>, vector<8x8xbf16>
    tpu.vector_store %arg13[%c0_17, %c0_18], %34 {strides = array<i32>} : memref<8x32xbf16, #tpu.memory_space<vmem>>, vector<8x8xbf16>,
    %36 = vector.extract_strided_slice %13 {offsets = [0, 8], sizes = [8, 8], strides = [1, 1]} : vector<8x32xf32> to vector<8x8xf32>
    %37 = arith.truncf %36 : vector<8x8xf32> to vector<8x8xbf16>
    %c0_19 = arith.constant 0 : index
    %c1_20 = arith.constant 1 : index
    %c0_21 = arith.constant 0 : index
    %c0_22 = arith.constant 0 : index
    %38 = vector.load %arg12[%c0_19, %c1_20, %c0_21, %c0_22] : memref<2x4x8x8xbf16, #tpu.memory_space<vmem>>, vector<1x1x8x8xbf16>
    %39 = vector.shape_cast %38 : vector<1x1x8x8xbf16> to vector<8x8xbf16>
    %c1_23 = arith.constant 1 : index
    %c1_24 = arith.constant 1 : index
    %c0_25 = arith.constant 0 : index
    %c0_26 = arith.constant 0 : index
    %40 = vector.load %arg12[%c1_23, %c1_24, %c0_25, %c0_26] : memref<2x4x8x8xbf16, #tpu.memory_space<vmem>>, vector<1x1x8x8xbf16>
    %41 = vector.shape_cast %40 : vector<1x1x8x8xbf16> to vector<8x8xbf16>
    %cst_27 = arith.constant dense<0.000000e+00> : vector<8x8xf32>
    %42 = tpu.matmul %37, %39, %cst_27 {dimension_numbers = #tpu.dot_dimension_numbers<[1], [1], [0], [0], [0, 0, 1, 0], [], []>} : vector<8x8xbf16>, vector<8x8xbf16>, vector<8x8xf32> -> vector<8x8xf32>
    %cst_28 = arith.constant dense<0xFF800000> : vector<8xf32>
    %43 = vector.multi_reduction <maximumf>, %42, %cst_28 [1] : vector<8x8xf32> to vector<8xf32>
    %44 = vector.shape_cast %43 : vector<8xf32> to vector<8x1xf32>
    %45 = vector.broadcast %44 : vector<8x1xf32> to vector<8x8xf32>
    %46 = arith.subf %42, %45 : vector<8x8xf32>
    %47 = arith.truncf %46 : vector<8x8xf32> to vector<8x8xbf16>
    %48 = math.exp %47 : vector<8x8xbf16>
    %49 = arith.extf %48 : vector<8x8xbf16> to vector<8x8xf32>
    %cst_29 = arith.constant dense<0.000000e+00> : vector<8xf32>
    %50 = vector.multi_reduction <add>, %49, %cst_29 [1] : vector<8x8xf32> to vector<8xf32>
    %51 = vector.shape_cast %50 : vector<8xf32> to vector<8x1xf32>
    %cst_30 = arith.constant dense<0.000000e+00> : vector<8x8xf32>
    %52 = tpu.matmul %48, %41, %cst_30 {dimension_numbers = #tpu.dot_dimension_numbers<[1], [0], [0], [1], [0, 0, 1, 1], [], []>} : vector<8x8xbf16>, vector<8x8xbf16>, vector<8x8xf32> -> vector<8x8xf32>
    %53 = tpu.reciprocal %51 {approx = true} : vector<8x1xf32> -> vector<8x1xf32>
    %54 = vector.broadcast %53 : vector<8x1xf32> to vector<8x8xf32>
    %55 = arith.mulf %52, %54 : vector<8x8xf32>
    %56 = arith.truncf %55 : vector<8x8xf32> to vector<8x8xbf16>
    %c0_31 = arith.constant 0 : index
    %c8 = arith.constant 8 : index
    %57 = vector.load %arg13[%c0_31, %c8] : memref<8x32xbf16, #tpu.memory_space<vmem>>, vector<8x8xbf16>
    tpu.vector_store %arg13[%c0_31, %c8], %56 {strides = array<i32>} : memref<8x32xbf16, #tpu.memory_space<vmem>>, vector<8x8xbf16>,
    %58 = vector.extract_strided_slice %13 {offsets = [0, 16], sizes = [8, 8], strides = [1, 1]} : vector<8x32xf32> to vector<8x8xf32>
    %59 = arith.truncf %58 : vector<8x8xf32> to vector<8x8xbf16>
    %c0_32 = arith.constant 0 : index
    %c2 = arith.constant 2 : index
    %c0_33 = arith.constant 0 : index
    %c0_34 = arith.constant 0 : index
    %60 = vector.load %arg12[%c0_32, %c2, %c0_33, %c0_34] : memref<2x4x8x8xbf16, #tpu.memory_space<vmem>>, vector<1x1x8x8xbf16>
    %61 = vector.shape_cast %60 : vector<1x1x8x8xbf16> to vector<8x8xbf16>
    %c1_35 = arith.constant 1 : index
    %c2_36 = arith.constant 2 : index
    %c0_37 = arith.constant 0 : index
    %c0_38 = arith.constant 0 : index
    %62 = vector.load %arg12[%c1_35, %c2_36, %c0_37, %c0_38] : memref<2x4x8x8xbf16, #tpu.memory_space<vmem>>, vector<1x1x8x8xbf16>
    %63 = vector.shape_cast %62 : vector<1x1x8x8xbf16> to vector<8x8xbf16>
    %cst_39 = arith.constant dense<0.000000e+00> : vector<8x8xf32>
    %64 = tpu.matmul %59, %61, %cst_39 {dimension_numbers = #tpu.dot_dimension_numbers<[1], [1], [0], [0], [0, 0, 1, 0], [], []>} : vector<8x8xbf16>, vector<8x8xbf16>, vector<8x8xf32> -> vector<8x8xf32>
    %cst_40 = arith.constant dense<0xFF800000> : vector<8xf32>
    %65 = vector.multi_reduction <maximumf>, %64, %cst_40 [1] : vector<8x8xf32> to vector<8xf32>
    %66 = vector.shape_cast %65 : vector<8xf32> to vector<8x1xf32>
    %67 = vector.broadcast %66 : vector<8x1xf32> to vector<8x8xf32>
    %68 = arith.subf %64, %67 : vector<8x8xf32>
    %69 = arith.truncf %68 : vector<8x8xf32> to vector<8x8xbf16>
    %70 = math.exp %69 : vector<8x8xbf16>
    %71 = arith.extf %70 : vector<8x8xbf16> to vector<8x8xf32>
    %cst_41 = arith.constant dense<0.000000e+00> : vector<8xf32>
    %72 = vector.multi_reduction <add>, %71, %cst_41 [1] : vector<8x8xf32> to vector<8xf32>
    %73 = vector.shape_cast %72 : vector<8xf32> to vector<8x1xf32>
    %cst_42 = arith.constant dense<0.000000e+00> : vector<8x8xf32>
    %74 = tpu.matmul %70, %63, %cst_42 {dimension_numbers = #tpu.dot_dimension_numbers<[1], [0], [0], [1], [0, 0, 1, 1], [], []>} : vector<8x8xbf16>, vector<8x8xbf16>, vector<8x8xf32> -> vector<8x8xf32>
    %75 = tpu.reciprocal %73 {approx = true} : vector<8x1xf32> -> vector<8x1xf32>
    %76 = vector.broadcast %75 : vector<8x1xf32> to vector<8x8xf32>
    %77 = arith.mulf %74, %76 : vector<8x8xf32>
    %78 = arith.truncf %77 : vector<8x8xf32> to vector<8x8xbf16>
    %c0_43 = arith.constant 0 : index
    %c16 = arith.constant 16 : index
    %79 = vector.load %arg13[%c0_43, %c16] : memref<8x32xbf16, #tpu.memory_space<vmem>>, vector<8x8xbf16>
    tpu.vector_store %arg13[%c0_43, %c16], %78 {strides = array<i32>} : memref<8x32xbf16, #tpu.memory_space<vmem>>, vector<8x8xbf16>,
    %80 = vector.extract_strided_slice %13 {offsets = [0, 24], sizes = [8, 8], strides = [1, 1]} : vector<8x32xf32> to vector<8x8xf32>
    %81 = arith.truncf %80 : vector<8x8xf32> to vector<8x8xbf16>
    %c0_44 = arith.constant 0 : index
    %c3 = arith.constant 3 : index
    %c0_45 = arith.constant 0 : index
    %c0_46 = arith.constant 0 : index
    %82 = vector.load %arg12[%c0_44, %c3, %c0_45, %c0_46] : memref<2x4x8x8xbf16, #tpu.memory_space<vmem>>, vector<1x1x8x8xbf16>
    %83 = vector.shape_cast %82 : vector<1x1x8x8xbf16> to vector<8x8xbf16>
    %c1_47 = arith.constant 1 : index
    %c3_48 = arith.constant 3 : index
    %c0_49 = arith.constant 0 : index
    %c0_50 = arith.constant 0 : index
    %84 = vector.load %arg12[%c1_47, %c3_48, %c0_49, %c0_50] : memref<2x4x8x8xbf16, #tpu.memory_space<vmem>>, vector<1x1x8x8xbf16>
    %85 = vector.shape_cast %84 : vector<1x1x8x8xbf16> to vector<8x8xbf16>
    %cst_51 = arith.constant dense<0.000000e+00> : vector<8x8xf32>
    %86 = tpu.matmul %81, %83, %cst_51 {dimension_numbers = #tpu.dot_dimension_numbers<[1], [1], [0], [0], [0, 0, 1, 0], [], []>} : vector<8x8xbf16>, vector<8x8xbf16>, vector<8x8xf32> -> vector<8x8xf32>
    %cst_52 = arith.constant dense<0xFF800000> : vector<8xf32>
    %87 = vector.multi_reduction <maximumf>, %86, %cst_52 [1] : vector<8x8xf32> to vector<8xf32>
    %88 = vector.shape_cast %87 : vector<8xf32> to vector<8x1xf32>
    %89 = vector.broadcast %88 : vector<8x1xf32> to vector<8x8xf32>
    %90 = arith.subf %86, %89 : vector<8x8xf32>
    %91 = arith.truncf %90 : vector<8x8xf32> to vector<8x8xbf16>
    %92 = math.exp %91 : vector<8x8xbf16>
    %93 = arith.extf %92 : vector<8x8xbf16> to vector<8x8xf32>
    %cst_53 = arith.constant dense<0.000000e+00> : vector<8xf32>
    %94 = vector.multi_reduction <add>, %93, %cst_53 [1] : vector<8x8xf32> to vector<8xf32>
    %95 = vector.shape_cast %94 : vector<8xf32> to vector<8x1xf32>
    %cst_54 = arith.constant dense<0.000000e+00> : vector<8x8xf32>
    %96 = tpu.matmul %92, %85, %cst_54 {dimension_numbers = #tpu.dot_dimension_numbers<[1], [0], [0], [1], [0, 0, 1, 1], [], []>} : vector<8x8xbf16>, vector<8x8xbf16>, vector<8x8xf32> -> vector<8x8xf32>
    %97 = tpu.reciprocal %95 {approx = true} : vector<8x1xf32> -> vector<8x1xf32>
    %98 = vector.broadcast %97 : vector<8x1xf32> to vector<8x8xf32>
    %99 = arith.mulf %96, %98 : vector<8x8xf32>
    %100 = arith.truncf %99 : vector<8x8xf32> to vector<8x8xbf16>
    %c0_55 = arith.constant 0 : index
    %c24 = arith.constant 24 : index
    %101 = vector.load %arg13[%c0_55, %c24] : memref<8x32xbf16, #tpu.memory_space<vmem>>, vector<8x8xbf16>
    tpu.vector_store %arg13[%c0_55, %c24], %100 {strides = array<i32>} : memref<8x32xbf16, #tpu.memory_space<vmem>>, vector<8x8xbf16>,
    %c0_56 = arith.constant 0 : index
    %c0_57 = arith.constant 0 : index
    %102 = vector.load %arg13[%c0_56, %c0_57] : memref<8x32xbf16, #tpu.memory_space<vmem>>, vector<8x32xbf16>
    %c0_58 = arith.constant 0 : index
    %c0_59 = arith.constant 0 : index
    %103 = vector.load %arg7[%c0_58, %c0_59] : memref<32x32xbf16, #tpu.memory_space<vmem>>, vector<32x32xbf16>
    %cst_60 = arith.constant dense<0.000000e+00> : vector<8x32xf32>
    %104 = tpu.matmul %102, %103, %cst_60 {dimension_numbers = #tpu.dot_dimension_numbers<[1], [0], [0], [1], [0, 0, 1, 1], [], []>} : vector<8x32xbf16>, vector<32x32xbf16>, vector<8x32xf32> -> vector<8x32xf32>
    %c0_61 = arith.constant 0 : index
    %c0_62 = arith.constant 0 : index
    %105 = vector.load %arg8[%c0_61, %c0_62] : memref<1x32xf32, #tpu.memory_space<vmem>>, vector<1x32xf32>
    %106 = vector.broadcast %105 : vector<1x32xf32> to vector<8x32xf32>
    %107 = arith.addf %104, %106 : vector<8x32xf32>
    %108 = arith.addf %107, %7 : vector<8x32xf32>
    %cst_63 = arith.constant dense<0.000000e+00> : vector<8xf32>
    %109 = vector.multi_reduction <add>, %108, %cst_63 [1] : vector<8x32xf32> to vector<8xf32>
    %110 = vector.shape_cast %109 : vector<8xf32> to vector<8x1xf32>
    %cst_64 = arith.constant 3.200000e+01 : f32
    %111 = vector.broadcast %cst_64 : f32 to vector<8x1xf32>
    %112 = arith.divf %110, %111 : vector<8x1xf32>
    %113 = vector.broadcast %112 : vector<8x1xf32> to vector<8x32xf32>
    %114 = arith.subf %108, %113 : vector<8x32xf32>
    %115 = arith.mulf %114, %114 : vector<8x32xf32>
    %cst_65 = arith.constant dense<0.000000e+00> : vector<8xf32>
    %116 = vector.multi_reduction <add>, %115, %cst_65 [1] : vector<8x32xf32> to vector<8xf32>
    %117 = vector.shape_cast %116 : vector<8xf32> to vector<8x1xf32>
    %cst_66 = arith.constant 3.200000e+01 : f32
    %118 = vector.broadcast %cst_66 : f32 to vector<8x1xf32>
    %119 = arith.divf %117, %118 : vector<8x1xf32>
    %120 = vector.broadcast %112 : vector<8x1xf32> to vector<8x32xf32>
    %121 = arith.subf %108, %120 : vector<8x32xf32>
    %cst_67 = arith.constant 9.99999974E-6 : f32
    %122 = vector.broadcast %cst_67 : f32 to vector<8x1xf32>
    %123 = arith.addf %119, %122 : vector<8x1xf32>
    %124 = math.rsqrt %123 : vector<8x1xf32>
    %125 = vector.broadcast %124 : vector<8x1xf32> to vector<8x32xf32>
    %126 = arith.mulf %121, %125 : vector<8x32xf32>
    %c0_68 = arith.constant 0 : index
    %c0_69 = arith.constant 0 : index
    %127 = vector.load %arg9[%c0_68, %c0_69] : memref<1x32xf32, #tpu.memory_space<vmem>>, vector<1x32xf32>
    %128 = vector.broadcast %127 : vector<1x32xf32> to vector<8x32xf32>
    %129 = arith.mulf %128, %126 : vector<8x32xf32>
    %c0_70 = arith.constant 0 : index
    %c0_71 = arith.constant 0 : index
    %130 = vector.load %arg10[%c0_70, %c0_71] : memref<1x32xf32, #tpu.memory_space<vmem>>, vector<1x32xf32>
    %131 = vector.broadcast %130 : vector<1x32xf32> to vector<8x32xf32>
    %132 = arith.addf %129, %131 : vector<8x32xf32>
    %c0_72 = arith.constant 0 : index
    %c0_73 = arith.constant 0 : index
    %c0_74 = arith.constant 0 : index
    %133 = vector.load %arg11[%c0_72, %c0_73, %c0_74] : memref<1x8x32xf32, #tpu.memory_space<vmem>>, vector<1x8x32xf32>
    %134 = vector.shape_cast %133 : vector<1x8x32xf32> to vector<8x32xf32>
    %135 = vector.shape_cast %132 : vector<8x32xf32> to vector<1x8x32xf32>
    tpu.vector_store %arg11[%c0_72, %c0_73, %c0_74], %135 {strides = array<i32>} : memref<1x8x32xf32, #tpu.memory_space<vmem>>, vector<1x8x32xf32>,
    return
  }
  func.func @transform_0(%arg0: i32, %arg1: i32) -> (i32, i32, i32) {
    %c0_i32 = arith.constant 0 : i32
    %c0_i32_0 = arith.constant 0 : i32
    %c0_i32_1 = arith.constant 0 : i32
    return %arg0, %c0_i32, %c0_i32_0 : i32, i32, i32
  }
  func.func @transform_1(%arg0: i32, %arg1: i32) -> (i32, i32) {
    %c0_i32 = arith.constant 0 : i32
    %c0_i32_0 = arith.constant 0 : i32
    %c0_i32_1 = arith.constant 0 : i32
    return %c0_i32, %c0_i32_0 : i32, i32
  }
  func.func @transform_2(%arg0: i32, %arg1: i32) -> (i32, i32) {
    %c0_i32 = arith.constant 0 : i32
    %c0_i32_0 = arith.constant 0 : i32
    %c0_i32_1 = arith.constant 0 : i32
    return %c0_i32, %c0_i32_0 : i32, i32
  }
  func.func @transform_3(%arg0: i32, %arg1: i32) -> (i32, i32) {
    %c0_i32 = arith.constant 0 : i32
    %c0_i32_0 = arith.constant 0 : i32
    %c0_i32_1 = arith.constant 0 : i32
    return %c0_i32, %c0_i32_0 : i32, i32
  }
  func.func @transform_4(%arg0: i32, %arg1: i32) -> (i32, i32) {
    %c0_i32 = arith.constant 0 : i32
    %c0_i32_0 = arith.constant 0 : i32
    %c0_i32_1 = arith.constant 0 : i32
    return %c0_i32, %c0_i32_0 : i32, i32
  }
  func.func @transform_5(%arg0: i32, %arg1: i32) -> (i32, i32) {
    %c0_i32 = arith.constant 0 : i32
    %c0_i32_0 = arith.constant 0 : i32
    %c0_i32_1 = arith.constant 0 : i32
    return %c0_i32, %c0_i32_0 : i32, i32
  }
  func.func @transform_6(%arg0: i32, %arg1: i32) -> (i32, i32) {
    %c0_i32 = arith.constant 0 : i32
    %c0_i32_0 = arith.constant 0 : i32
    %c0_i32_1 = arith.constant 0 : i32
    return %c0_i32, %c0_i32_0 : i32, i32
  }
  func.func @transform_7(%arg0: i32, %arg1: i32) -> (i32, i32) {
    %c0_i32 = arith.constant 0 : i32
    %c0_i32_0 = arith.constant 0 : i32
    %c0_i32_1 = arith.constant 0 : i32
    return %c0_i32, %c0_i32_0 : i32, i32
  }
  func.func @transform_8(%arg0: i32, %arg1: i32) -> (i32, i32) {
    %c0_i32 = arith.constant 0 : i32
    %c0_i32_0 = arith.constant 0 : i32
    %c0_i32_1 = arith.constant 0 : i32
    return %c0_i32, %c0_i32_0 : i32, i32
  }
  func.func @transform_9(%arg0: i32, %arg1: i32) -> (i32, i32, i32) {
    %c0_i32 = arith.constant 0 : i32
    %c0_i32_0 = arith.constant 0 : i32
    return %arg0, %arg1, %c0_i32 : i32, i32, i32
  }
}

module attributes {stable_mosaic.version = 11 : i64} {
  func.func @_mha_kernel(%arg0: i32, %arg1: i32, %arg2: memref<1x8x32xf32, #tpu.memory_space<vmem>>, %arg3: memref<32x32xbf16, #tpu.memory_space<vmem>>, %arg4: memref<1x32xf32, #tpu.memory_space<vmem>>, %arg5: memref<32x64xbf16, #tpu.memory_space<vmem>>, %arg6: memref<1x64xf32, #tpu.memory_space<vmem>>, %arg7: memref<32x32xbf16, #tpu.memory_space<vmem>>, %arg8: memref<1x32xf32, #tpu.memory_space<vmem>>, %arg9: memref<1x32xf32, #tpu.memory_space<vmem>>, %arg10: memref<1x32xf32, #tpu.memory_space<vmem>>, %arg11: memref<1x8x32xf32, #tpu.memory_space<vmem>>, %arg12: memref<2x4x8x8xbf16, #tpu.memory_space<vmem>>, %arg13: memref<8x32xbf16, #tpu.memory_space<vmem>>) attributes {dimension_semantics = [#tpu.dimension_semantics<parallel>, #tpu.dimension_semantics<arbitrary>], iteration_bounds = array<i64: 2, 1>, scalar_prefetch = 0 : i64, scratch_operands = 2 : i64, tpu.core_type = #tpu.core_type<tc>, window_params = [{transform_indices = @transform_0, window_bounds = array<i64: 1, 8, 32>}, {pipeline_mode = #tpu.pipeline_mode<synchronous>, transform_indices = @transform_1, window_bounds = array<i64: 32, 32>}, {pipeline_mode = #tpu.pipeline_mode<synchronous>, transform_indices = @transform_2, window_bounds = array<i64: 1, 32>}, {pipeline_mode = #tpu.pipeline_mode<synchronous>, transform_indices = @transform_3, window_bounds = array<i64: 32, 64>}, {pipeline_mode = #tpu.pipeline_mode<synchronous>, transform_indices = @transform_4, window_bounds = array<i64: 1, 64>}, {pipeline_mode = #tpu.pipeline_mode<synchronous>, transform_indices = @transform_5, window_bounds = array<i64: 32, 32>}, {pipeline_mode = #tpu.pipeline_mode<synchronous>, transform_indices = @transform_6, window_bounds = array<i64: 1, 32>}, {pipeline_mode = #tpu.pipeline_mode<synchronous>, transform_indices = @transform_7, window_bounds = array<i64: 1, 32>}, {pipeline_mode = #tpu.pipeline_mode<synchronous>, transform_indices = @transform_8, window_bounds = array<i64: 1, 32>}, {transform_indices = @transform_9, window_bounds = array<i64: 1, 8, 32>}]} {
    %c0_i32 = arith.constant 0 : i32
    %0 = arith.cmpi eq, %arg1, %c0_i32 : i32
    %1 = arith.extui %0 : i1 to i32
    %c0_i32_0 = arith.constant 0 : i32
    %2 = arith.cmpi ne, %1, %c0_i32_0 : i32
    scf.if %2 {
      %c0_75 = arith.constant 0 : index
      %c0_76 = arith.constant 0 : index
      %c0_77 = arith.constant 0 : index
      %136 = vector.load %arg2[%c0_75, %c0_76, %c0_77] : memref<1x8x32xf32, #tpu.memory_space<vmem>>, vector<1x8x32xf32>
      %137 = vector.shape_cast %136 : vector<1x8x32xf32> to vector<8x32xf32>
      %138 = arith.truncf %137 : vector<8x32xf32> to vector<8x32xbf16>
      %c0_78 = arith.constant 0 : index
      %c0_79 = arith.constant 0 : index
      %139 = vector.load %arg5[%c0_78, %c0_79] : memref<32x64xbf16, #tpu.memory_space<vmem>>, vector<32x64xbf16>
      %cst_80 = arith.constant dense<0.000000e+00> : vector<8x64xf32>
      %140 = tpu.matmul %138, %139, %cst_80 {dimension_numbers = #tpu.dot_dimension_numbers<[1], [0], [0], [1], [0, 0, 1, 1], [], []>} : vector<8x32xbf16>, vector<32x64xbf16>, vector<8x64xf32> -> vector<8x64xf32>
      %c0_81 = arith.constant 0 : index
      %c0_82 = arith.constant 0 : index
      %141 = vector.load %arg6[%c0_81, %c0_82] : memref<1x64xf32, #tpu.memory_space<vmem>>, vector<1x64xf32>
      %142 = vector.broadcast %141 : vector<1x64xf32> to vector<8x64xf32>
      %143 = arith.addf %140, %142 : vector<8x64xf32>
      %144 = vector.extract_strided_slice %143 {offsets = [0, 0], sizes = [8, 8], strides = [1, 1]} : vector<8x64xf32> to vector<8x8xf32>
      %145 = arith.truncf %144 : vector<8x8xf32> to vector<8x8xbf16>
      %c0_83 = arith.constant 0 : index
      %c0_84 = arith.constant 0 : index
      %c0_85 = arith.constant 0 : index
      %c0_86 = arith.constant 0 : index
      %146 = vector.load %arg12[%c0_83, %c0_84, %c0_85, %c0_86] : memref<2x4x8x8xbf16, #tpu.memory_space<vmem>>, vector<1x1x8x8xbf16>
      %147 = vector.shape_cast %146 : vector<1x1x8x8xbf16> to vector<8x8xbf16>
      %148 = vector.shape_cast %145 : vector<8x8xbf16> to vector<1x1x8x8xbf16>
      tpu.vector_store %arg12[%c0_83, %c0_84, %c0_85, %c0_86], %148 {strides = array<i32>} : memref<2x4x8x8xbf16, #tpu.memory_space<vmem>>, vector<1x1x8x8xbf16>,
      %149 = vector.extract_strided_slice %143 {offsets = [0, 32], sizes = [8, 8], strides = [1, 1]} : vector<8x64xf32> to vector<8x8xf32>
      %150 = arith.truncf %149 : vector<8x8xf32> to vector<8x8xbf16>
      %c1_87 = arith.constant 1 : index
      %c0_88 = arith.constant 0 : index
      %c0_89 = arith.constant 0 : index
      %c0_90 = arith.constant 0 : index
      %151 = vector.load %arg12[%c1_87, %c0_88, %c0_89, %c0_90] : memref<2x4x8x8xbf16, #tpu.memory_space<vmem>>, vector<1x1x8x8xbf16>
      %152 = vector.shape_cast %151 : vector<1x1x8x8xbf16> to vector<8x8xbf16>
      %153 = vector.shape_cast %150 : vector<8x8xbf16> to vector<1x1x8x8xbf16>
      tpu.vector_store %arg12[%c1_87, %c0_88, %c0_89, %c0_90], %153 {strides = array<i32>} : memref<2x4x8x8xbf16, #tpu.memory_space<vmem>>, vector<1x1x8x8xbf16>,
      %154 = vector.extract_strided_slice %143 {offsets = [0, 8], sizes = [8, 8], strides = [1, 1]} : vector<8x64xf32> to vector<8x8xf32>
      %155 = arith.truncf %154 : vector<8x8xf32> to vector<8x8xbf16>
      %c0_91 = arith.constant 0 : index
      %c1_92 = arith.constant 1 : index
      %c0_93 = arith.constant 0 : index
      %c0_94 = arith.constant 0 : index
      %156 = vector.load %arg12[%c0_91, %c1_92, %c0_93, %c0_94] : memref<2x4x8x8xbf16, #tpu.memory_space<vmem>>, vector<1x1x8x8xbf16>
      %157 = vector.shape_cast %156 : vector<1x1x8x8xbf16> to vector<8x8xbf16>
      %158 = vector.shape_cast %155 : vector<8x8xbf16> to vector<1x1x8x8xbf16>
      tpu.vector_store %arg12[%c0_91, %c1_92, %c0_93, %c0_94], %158 {strides = array<i32>} : memref<2x4x8x8xbf16, #tpu.memory_space<vmem>>, vector<1x1x8x8xbf16>,
      %159 = vector.extract_strided_slice %143 {offsets = [0, 40], sizes = [8, 8], strides = [1, 1]} : vector<8x64xf32> to vector<8x8xf32>
      %160 = arith.truncf %159 : vector<8x8xf32> to vector<8x8xbf16>
      %c1_95 = arith.constant 1 : index
      %c1_96 = arith.constant 1 : index
      %c0_97 = arith.constant 0 : index
      %c0_98 = arith.constant 0 : index
      %161 = vector.load %arg12[%c1_95, %c1_96, %c0_97, %c0_98] : memref<2x4x8x8xbf16, #tpu.memory_space<vmem>>, vector<1x1x8x8xbf16>
      %162 = vector.shape_cast %161 : vector<1x1x8x8xbf16> to vector<8x8xbf16>
      %163 = vector.shape_cast %160 : vector<8x8xbf16> to vector<1x1x8x8xbf16>
      tpu.vector_store %arg12[%c1_95, %c1_96, %c0_97, %c0_98], %163 {strides = array<i32>} : memref<2x4x8x8xbf16, #tpu.memory_space<vmem>>, vector<1x1x8x8xbf16>,
      %164 = vector.extract_strided_slice %143 {offsets = [0, 16], sizes = [8, 8], strides = [1, 1]} : vector<8x64xf32> to vector<8x8xf32>
      %165 = arith.truncf %164 : vector<8x8xf32> to vector<8x8xbf16>
      %c0_99 = arith.constant 0 : index
      %c2_100 = arith.constant 2 : index
      %c0_101 = arith.constant 0 : index
      %c0_102 = arith.constant 0 : index
      %166 = vector.load %arg12[%c0_99, %c2_100, %c0_101, %c0_102] : memref<2x4x8x8xbf16, #tpu.memory_space<vmem>>, vector<1x1x8x8xbf16>
      %167 = vector.shape_cast %166 : vector<1x1x8x8xbf16> to vector<8x8xbf16>
      %168 = vector.shape_cast %165 : vector<8x8xbf16> to vector<1x1x8x8xbf16>
      tpu.vector_store %arg12[%c0_99, %c2_100, %c0_101, %c0_102], %168 {strides = array<i32>} : memref<2x4x8x8xbf16, #tpu.memory_space<vmem>>, vector<1x1x8x8xbf16>,
      %169 = vector.extract_strided_slice %143 {offsets = [0, 48], sizes = [8, 8], strides = [1, 1]} : vector<8x64xf32> to vector<8x8xf32>
      %170 = arith.truncf %169 : vector<8x8xf32> to vector<8x8xbf16>
      %c1_103 = arith.constant 1 : index
      %c2_104 = arith.constant 2 : index
      %c0_105 = arith.constant 0 : index
      %c0_106 = arith.constant 0 : index
      %171 = vector.load %arg12[%c1_103, %c2_104, %c0_105, %c0_106] : memref<2x4x8x8xbf16, #tpu.memory_space<vmem>>, vector<1x1x8x8xbf16>
      %172 = vector.shape_cast %171 : vector<1x1x8x8xbf16> to vector<8x8xbf16>
      %173 = vector.shape_cast %170 : vector<8x8xbf16> to vector<1x1x8x8xbf16>
      tpu.vector_store %arg12[%c1_103, %c2_104, %c0_105, %c0_106], %173 {strides = array<i32>} : memref<2x4x8x8xbf16, #tpu.memory_space<vmem>>, vector<1x1x8x8xbf16>,
      %174 = vector.extract_strided_slice %143 {offsets = [0, 24], sizes = [8, 8], strides = [1, 1]} : vector<8x64xf32> to vector<8x8xf32>
      %175 = arith.truncf %174 : vector<8x8xf32> to vector<8x8xbf16>
      %c0_107 = arith.constant 0 : index
      %c3_108 = arith.constant 3 : index
      %c0_109 = arith.constant 0 : index
      %c0_110 = arith.constant 0 : index
      %176 = vector.load %arg12[%c0_107, %c3_108, %c0_109, %c0_110] : memref<2x4x8x8xbf16, #tpu.memory_space<vmem>>, vector<1x1x8x8xbf16>
      %177 = vector.shape_cast %176 : vector<1x1x8x8xbf16> to vector<8x8xbf16>
      %178 = vector.shape_cast %175 : vector<8x8xbf16> to vector<1x1x8x8xbf16>
      tpu.vector_store %arg12[%c0_107, %c3_108, %c0_109, %c0_110], %178 {strides = array<i32>} : memref<2x4x8x8xbf16, #tpu.memory_space<vmem>>, vector<1x1x8x8xbf16>,
      %179 = vector.extract_strided_slice %143 {offsets = [0, 56], sizes = [8, 8], strides = [1, 1]} : vector<8x64xf32> to vector<8x8xf32>
      %180 = arith.truncf %179 : vector<8x8xf32> to vector<8x8xbf16>
      %c1_111 = arith.constant 1 : index
      %c3_112 = arith.constant 3 : index
      %c0_113 = arith.constant 0 : index
      %c0_114 = arith.constant 0 : index
      %181 = vector.load %arg12[%c1_111, %c3_112, %c0_113, %c0_114] : memref<2x4x8x8xbf16, #tpu.memory_space<vmem>>, vector<1x1x8x8xbf16>
      %182 = vector.shape_cast %181 : vector<1x1x8x8xbf16> to vector<8x8xbf16>
      %183 = vector.shape_cast %180 : vector<8x8xbf16> to vector<1x1x8x8xbf16>
      tpu.vector_store %arg12[%c1_111, %c3_112, %c0_113, %c0_114], %183 {strides = array<i32>} : memref<2x4x8x8xbf16, #tpu.memory_space<vmem>>, vector<1x1x8x8xbf16>,
    } else {
    }
    %c8_i32 = arith.constant 8 : i32
    %3 = arith.muli %arg1, %c8_i32 : i32
    %4 = tpu.assume_multiple %3, 8 : i32
    %c0 = arith.constant 0 : index
    %5 = arith.index_cast %4 : i32 to index
    %c0_1 = arith.constant 0 : index
    %6 = vector.load %arg2[%c0, %5, %c0_1] : memref<1x8x32xf32, #tpu.memory_space<vmem>>, vector<1x8x32xf32>
    %7 = vector.shape_cast %6 : vector<1x8x32xf32> to vector<8x32xf32>
    %8 = arith.truncf %7 : vector<8x32xf32> to vector<8x32xbf16>
    %c0_2 = arith.constant 0 : index
    %c0_3 = arith.constant 0 : index
    %9 = vector.load %arg3[%c0_2, %c0_3] : memref<32x32xbf16, #tpu.memory_space<vmem>>, vector<32x32xbf16>
    %cst = arith.constant dense<0.000000e+00> : vector<8x32xf32>
    %10 = tpu.matmul %8, %9, %cst {dimension_numbers = #tpu.dot_dimension_numbers<[1], [0], [0], [1], [0, 0, 1, 1], [], []>} : vector<8x32xbf16>, vector<32x32xbf16>, vector<8x32xf32> -> vector<8x32xf32>
    %c0_4 = arith.constant 0 : index
    %c0_5 = arith.constant 0 : index
    %11 = vector.load %arg4[%c0_4, %c0_5] : memref<1x32xf32, #tpu.memory_space<vmem>>, vector<1x32xf32>
    %12 = vector.broadcast %11 : vector<1x32xf32> to vector<8x32xf32>
    %13 = arith.addf %10, %12 : vector<8x32xf32>
    %14 = vector.extract_strided_slice %13 {offsets = [0, 0], sizes = [8, 8], strides = [1, 1]} : vector<8x32xf32> to vector<8x8xf32>
    %15 = arith.truncf %14 : vector<8x8xf32> to vector<8x8xbf16>
    %c0_6 = arith.constant 0 : index
    %c0_7 = arith.constant 0 : index
    %c0_8 = arith.constant 0 : index
    %c0_9 = arith.constant 0 : index
    %16 = vector.load %arg12[%c0_6, %c0_7, %c0_8, %c0_9] : memref<2x4x8x8xbf16, #tpu.memory_space<vmem>>, vector<1x1x8x8xbf16>
    %17 = vector.shape_cast %16 : vector<1x1x8x8xbf16> to vector<8x8xbf16>
    %c1 = arith.constant 1 : index
    %c0_10 = arith.constant 0 : index
    %c0_11 = arith.constant 0 : index
    %c0_12 = arith.constant 0 : index
    %18 = vector.load %arg12[%c1, %c0_10, %c0_11, %c0_12] : memref<2x4x8x8xbf16, #tpu.memory_space<vmem>>, vector<1x1x8x8xbf16>
    %19 = vector.shape_cast %18 : vector<1x1x8x8xbf16> to vector<8x8xbf16>
    %cst_13 = arith.constant dense<0.000000e+00> : vector<8x8xf32>
    %20 = tpu.matmul %15, %17, %cst_13 {dimension_numbers = #tpu.dot_dimension_numbers<[1], [1], [0], [0], [0, 0, 1, 0], [], []>} : vector<8x8xbf16>, vector<8x8xbf16>, vector<8x8xf32> -> vector<8x8xf32>
    %cst_14 = arith.constant dense<0xFF800000> : vector<8xf32>
    %21 = vector.multi_reduction <maximumf>, %20, %cst_14 [1] : vector<8x8xf32> to vector<8xf32>
    %22 = vector.shape_cast %21 : vector<8xf32> to vector<8x1xf32>
    %23 = vector.broadcast %22 : vector<8x1xf32> to vector<8x8xf32>
    %24 = arith.subf %20, %23 : vector<8x8xf32>
    %25 = arith.truncf %24 : vector<8x8xf32> to vector<8x8xbf16>
    %26 = math.exp %25 : vector<8x8xbf16>
    %27 = arith.extf %26 : vector<8x8xbf16> to vector<8x8xf32>
    %cst_15 = arith.constant dense<0.000000e+00> : vector<8xf32>
    %28 = vector.multi_reduction <add>, %27, %cst_15 [1] : vector<8x8xf32> to vector<8xf32>
    %29 = vector.shape_cast %28 : vector<8xf32> to vector<8x1xf32>
    %cst_16 = arith.constant dense<0.000000e+00> : vector<8x8xf32>
    %30 = tpu.matmul %26, %19, %cst_16 {dimension_numbers = #tpu.dot_dimension_numbers<[1], [0], [0], [1], [0, 0, 1, 1], [], []>} : vector<8x8xbf16>, vector<8x8xbf16>, vector<8x8xf32> -> vector<8x8xf32>
    %31 = tpu.reciprocal %29 {approx = true} : vector<8x1xf32> -> vector<8x1xf32>
    %32 = vector.broadcast %31 : vector<8x1xf32> to vector<8x8xf32>
    %33 = arith.mulf %30, %32 : vector<8x8xf32>
    %34 = arith.truncf %33 : vector<8x8xf32> to vector<8x8xbf16>
    %c0_17 = arith.constant 0 : index
    %c0_18 = arith.constant 0 : index
    %35 = vector.load %arg13[%c0_17, %c0_18] : memref<8x32xbf16, #tpu.memory_space<vmem>>, vector<8x8xbf16>
    tpu.vector_store %arg13[%c0_17, %c0_18], %34 {strides = array<i32>} : memref<8x32xbf16, #tpu.memory_space<vmem>>, vector<8x8xbf16>,
    %36 = vector.extract_strided_slice %13 {offsets = [0, 8], sizes = [8, 8], strides = [1, 1]} : vector<8x32xf32> to vector<8x8xf32>
    %37 = arith.truncf %36 : vector<8x8xf32> to vector<8x8xbf16>
    %c0_19 = arith.constant 0 : index
    %c1_20 = arith.constant 1 : index
    %c0_21 = arith.constant 0 : index
    %c0_22 = arith.constant 0 : index
    %38 = vector.load %arg12[%c0_19, %c1_20, %c0_21, %c0_22] : memref<2x4x8x8xbf16, #tpu.memory_space<vmem>>, vector<1x1x8x8xbf16>
    %39 = vector.shape_cast %38 : vector<1x1x8x8xbf16> to vector<8x8xbf16>
    %c1_23 = arith.constant 1 : index
    %c1_24 = arith.constant 1 : index
    %c0_25 = arith.constant 0 : index
    %c0_26 = arith.constant 0 : index
    %40 = vector.load %arg12[%c1_23, %c1_24, %c0_25, %c0_26] : memref<2x4x8x8xbf16, #tpu.memory_space<vmem>>, vector<1x1x8x8xbf16>
    %41 = vector.shape_cast %40 : vector<1x1x8x8xbf16> to vector<8x8xbf16>
    %cst_27 = arith.constant dense<0.000000e+00> : vector<8x8xf32>
    %42 = tpu.matmul %37, %39, %cst_27 {dimension_numbers = #tpu.dot_dimension_numbers<[1], [1], [0], [0], [0, 0, 1, 0], [], []>} : vector<8x8xbf16>, vector<8x8xbf16>, vector<8x8xf32> -> vector<8x8xf32>
    %cst_28 = arith.constant dense<0xFF800000> : vector<8xf32>
    %43 = vector.multi_reduction <maximumf>, %42, %cst_28 [1] : vector<8x8xf32> to vector<8xf32>
    %44 = vector.shape_cast %43 : vector<8xf32> to vector<8x1xf32>
    %45 = vector.broadcast %44 : vector<8x1xf32> to vector<8x8xf32>
    %46 = arith.subf %42, %45 : vector<8x8xf32>
    %47 = arith.truncf %46 : vector<8x8xf32> to vector<8x8xbf16>
    %48 = math.exp %47 : vector<8x8xbf16>
    %49 = arith.extf %48 : vector<8x8xbf16> to vector<8x8xf32>
    %cst_29 = arith.constant dense<0.000000e+00> : vector<8xf32>
    %50 = vector.multi_reduction <add>, %49, %cst_29 [1] : vector<8x8xf32> to vector<8xf32>
    %51 = vector.shape_cast %50 : vector<8xf32> to vector<8x1xf32>
    %cst_30 = arith.constant dense<0.000000e+00> : vector<8x8xf32>
    %52 = tpu.matmul %48, %41, %cst_30 {dimension_numbers = #tpu.dot_dimension_numbers<[1], [0], [0], [1], [0, 0, 1, 1], [], []>} : vector<8x8xbf16>, vector<8x8xbf16>, vector<8x8xf32> -> vector<8x8xf32>
    %53 = tpu.reciprocal %51 {approx = true} : vector<8x1xf32> -> vector<8x1xf32>
    %54 = vector.broadcast %53 : vector<8x1xf32> to vector<8x8xf32>
    %55 = arith.mulf %52, %54 : vector<8x8xf32>
    %56 = arith.truncf %55 : vector<8x8xf32> to vector<8x8xbf16>
    %c0_31 = arith.constant 0 : index
    %c8 = arith.constant 8 : index
    %57 = vector.load %arg13[%c0_31, %c8] : memref<8x32xbf16, #tpu.memory_space<vmem>>, vector<8x8xbf16>
    tpu.vector_store %arg13[%c0_31, %c8], %56 {strides = array<i32>} : memref<8x32xbf16, #tpu.memory_space<vmem>>, vector<8x8xbf16>,
    %58 = vector.extract_strided_slice %13 {offsets = [0, 16], sizes = [8, 8], strides = [1, 1]} : vector<8x32xf32> to vector<8x8xf32>
    %59 = arith.truncf %58 : vector<8x8xf32> to vector<8x8xbf16>
    %c0_32 = arith.constant 0 : index
    %c2 = arith.constant 2 : index
    %c0_33 = arith.constant 0 : index
    %c0_34 = arith.constant 0 : index
    %60 = vector.load %arg12[%c0_32, %c2, %c0_33, %c0_34] : memref<2x4x8x8xbf16, #tpu.memory_space<vmem>>, vector<1x1x8x8xbf16>
    %61 = vector.shape_cast %60 : vector<1x1x8x8xbf16> to vector<8x8xbf16>
    %c1_35 = arith.constant 1 : index
    %c2_36 = arith.constant 2 : index
    %c0_37 = arith.constant 0 : index
    %c0_38 = arith.constant 0 : index
    %62 = vector.load %arg12[%c1_35, %c2_36, %c0_37, %c0_38] : memref<2x4x8x8xbf16, #tpu.memory_space<vmem>>, vector<1x1x8x8xbf16>
    %63 = vector.shape_cast %62 : vector<1x1x8x8xbf16> to vector<8x8xbf16>
    %cst_39 = arith.constant dense<0.000000e+00> : vector<8x8xf32>
    %64 = tpu.matmul %59, %61, %cst_39 {dimension_numbers = #tpu.dot_dimension_numbers<[1], [1], [0], [0], [0, 0, 1, 0], [], []>} : vector<8x8xbf16>, vector<8x8xbf16>, vector<8x8xf32> -> vector<8x8xf32>
    %cst_40 = arith.constant dense<0xFF800000> : vector<8xf32>
    %65 = vector.multi_reduction <maximumf>, %64, %cst_40 [1] : vector<8x8xf32> to vector<8xf32>
    %66 = vector.shape_cast %65 : vector<8xf32> to vector<8x1xf32>
    %67 = vector.broadcast %66 : vector<8x1xf32> to vector<8x8xf32>
    %68 = arith.subf %64, %67 : vector<8x8xf32>
    %69 = arith.truncf %68 : vector<8x8xf32> to vector<8x8xbf16>
    %70 = math.exp %69 : vector<8x8xbf16>
    %71 = arith.extf %70 : vector<8x8xbf16> to vector<8x8xf32>
    %cst_41 = arith.constant dense<0.000000e+00> : vector<8xf32>
    %72 = vector.multi_reduction <add>, %71, %cst_41 [1] : vector<8x8xf32> to vector<8xf32>
    %73 = vector.shape_cast %72 : vector<8xf32> to vector<8x1xf32>
    %cst_42 = arith.constant dense<0.000000e+00> : vector<8x8xf32>
    %74 = tpu.matmul %70, %63, %cst_42 {dimension_numbers = #tpu.dot_dimension_numbers<[1], [0], [0], [1], [0, 0, 1, 1], [], []>} : vector<8x8xbf16>, vector<8x8xbf16>, vector<8x8xf32> -> vector<8x8xf32>
    %75 = tpu.reciprocal %73 {approx = true} : vector<8x1xf32> -> vector<8x1xf32>
    %76 = vector.broadcast %75 : vector<8x1xf32> to vector<8x8xf32>
    %77 = arith.mulf %74, %76 : vector<8x8xf32>
    %78 = arith.truncf %77 : vector<8x8xf32> to vector<8x8xbf16>
    %c0_43 = arith.constant 0 : index
    %c16 = arith.constant 16 : index
    %79 = vector.load %arg13[%c0_43, %c16] : memref<8x32xbf16, #tpu.memory_space<vmem>>, vector<8x8xbf16>
    tpu.vector_store %arg13[%c0_43, %c16], %78 {strides = array<i32>} : memref<8x32xbf16, #tpu.memory_space<vmem>>, vector<8x8xbf16>,
    %80 = vector.extract_strided_slice %13 {offsets = [0, 24], sizes = [8, 8], strides = [1, 1]} : vector<8x32xf32> to vector<8x8xf32>
    %81 = arith.truncf %80 : vector<8x8xf32> to vector<8x8xbf16>
    %c0_44 = arith.constant 0 : index
    %c3 = arith.constant 3 : index
    %c0_45 = arith.constant 0 : index
    %c0_46 = arith.constant 0 : index
    %82 = vector.load %arg12[%c0_44, %c3, %c0_45, %c0_46] : memref<2x4x8x8xbf16, #tpu.memory_space<vmem>>, vector<1x1x8x8xbf16>
    %83 = vector.shape_cast %82 : vector<1x1x8x8xbf16> to vector<8x8xbf16>
    %c1_47 = arith.constant 1 : index
    %c3_48 = arith.constant 3 : index
    %c0_49 = arith.constant 0 : index
    %c0_50 = arith.constant 0 : index
    %84 = vector.load %arg12[%c1_47, %c3_48, %c0_49, %c0_50] : memref<2x4x8x8xbf16, #tpu.memory_space<vmem>>, vector<1x1x8x8xbf16>
    %85 = vector.shape_cast %84 : vector<1x1x8x8xbf16> to vector<8x8xbf16>
    %cst_51 = arith.constant dense<0.000000e+00> : vector<8x8xf32>
    %86 = tpu.matmul %81, %83, %cst_51 {dimension_numbers = #tpu.dot_dimension_numbers<[1], [1], [0], [0], [0, 0, 1, 0], [], []>} : vector<8x8xbf16>, vector<8x8xbf16>, vector<8x8xf32> -> vector<8x8xf32>
    %cst_52 = arith.constant dense<0xFF800000> : vector<8xf32>
    %87 = vector.multi_reduction <maximumf>, %86, %cst_52 [1] : vector<8x8xf32> to vector<8xf32>
    %88 = vector.shape_cast %87 : vector<8xf32> to vector<8x1xf32>
    %89 = vector.broadcast %88 : vector<8x1xf32> to vector<8x8xf32>
    %90 = arith.subf %86, %89 : vector<8x8xf32>
    %91 = arith.truncf %90 : vector<8x8xf32> to vector<8x8xbf16>
    %92 = math.exp %91 : vector<8x8xbf16>
    %93 = arith.extf %92 : vector<8x8xbf16> to vector<8x8xf32>
    %cst_53 = arith.constant dense<0.000000e+00> : vector<8xf32>
    %94 = vector.multi_reduction <add>, %93, %cst_53 [1] : vector<8x8xf32> to vector<8xf32>
    %95 = vector.shape_cast %94 : vector<8xf32> to vector<8x1xf32>
    %cst_54 = arith.constant dense<0.000000e+00> : vector<8x8xf32>
    %96 = tpu.matmul %92, %85, %cst_54 {dimension_numbers = #tpu.dot_dimension_numbers<[1], [0], [0], [1], [0, 0, 1, 1], [], []>} : vector<8x8xbf16>, vector<8x8xbf16>, vector<8x8xf32> -> vector<8x8xf32>
    %97 = tpu.reciprocal %95 {approx = true} : vector<8x1xf32> -> vector<8x1xf32>
    %98 = vector.broadcast %97 : vector<8x1xf32> to vector<8x8xf32>
    %99 = arith.mulf %96, %98 : vector<8x8xf32>
    %100 = arith.truncf %99 : vector<8x8xf32> to vector<8x8xbf16>
    %c0_55 = arith.constant 0 : index
    %c24 = arith.constant 24 : index
    %101 = vector.load %arg13[%c0_55, %c24] : memref<8x32xbf16, #tpu.memory_space<vmem>>, vector<8x8xbf16>
    tpu.vector_store %arg13[%c0_55, %c24], %100 {strides = array<i32>} : memref<8x32xbf16, #tpu.memory_space<vmem>>, vector<8x8xbf16>,
    %c0_56 = arith.constant 0 : index
    %c0_57 = arith.constant 0 : index
    %102 = vector.load %arg13[%c0_56, %c0_57] : memref<8x32xbf16, #tpu.memory_space<vmem>>, vector<8x32xbf16>
    %c0_58 = arith.constant 0 : index
    %c0_59 = arith.constant 0 : index
    %103 = vector.load %arg7[%c0_58, %c0_59] : memref<32x32xbf16, #tpu.memory_space<vmem>>, vector<32x32xbf16>
    %cst_60 = arith.constant dense<0.000000e+00> : vector<8x32xf32>
    %104 = tpu.matmul %102, %103, %cst_60 {dimension_numbers = #tpu.dot_dimension_numbers<[1], [0], [0], [1], [0, 0, 1, 1], [], []>} : vector<8x32xbf16>, vector<32x32xbf16>, vector<8x32xf32> -> vector<8x32xf32>
    %c0_61 = arith.constant 0 : index
    %c0_62 = arith.constant 0 : index
    %105 = vector.load %arg8[%c0_61, %c0_62] : memref<1x32xf32, #tpu.memory_space<vmem>>, vector<1x32xf32>
    %106 = vector.broadcast %105 : vector<1x32xf32> to vector<8x32xf32>
    %107 = arith.addf %104, %106 : vector<8x32xf32>
    %108 = arith.addf %107, %7 : vector<8x32xf32>
    %cst_63 = arith.constant dense<0.000000e+00> : vector<8xf32>
    %109 = vector.multi_reduction <add>, %108, %cst_63 [1] : vector<8x32xf32> to vector<8xf32>
    %110 = vector.shape_cast %109 : vector<8xf32> to vector<8x1xf32>
    %cst_64 = arith.constant 3.200000e+01 : f32
    %111 = vector.broadcast %cst_64 : f32 to vector<8x1xf32>
    %112 = arith.divf %110, %111 : vector<8x1xf32>
    %113 = vector.broadcast %112 : vector<8x1xf32> to vector<8x32xf32>
    %114 = arith.subf %108, %113 : vector<8x32xf32>
    %115 = arith.mulf %114, %114 : vector<8x32xf32>
    %cst_65 = arith.constant dense<0.000000e+00> : vector<8xf32>
    %116 = vector.multi_reduction <add>, %115, %cst_65 [1] : vector<8x32xf32> to vector<8xf32>
    %117 = vector.shape_cast %116 : vector<8xf32> to vector<8x1xf32>
    %cst_66 = arith.constant 3.200000e+01 : f32
    %118 = vector.broadcast %cst_66 : f32 to vector<8x1xf32>
    %119 = arith.divf %117, %118 : vector<8x1xf32>
    %120 = vector.broadcast %112 : vector<8x1xf32> to vector<8x32xf32>
    %121 = arith.subf %108, %120 : vector<8x32xf32>
    %cst_67 = arith.constant 9.99999974E-6 : f32
    %122 = vector.broadcast %cst_67 : f32 to vector<8x1xf32>
    %123 = arith.addf %119, %122 : vector<8x1xf32>
    %124 = math.rsqrt %123 : vector<8x1xf32>
    %125 = vector.broadcast %124 : vector<8x1xf32> to vector<8x32xf32>
    %126 = arith.mulf %121, %125 : vector<8x32xf32>
    %c0_68 = arith.constant 0 : index
    %c0_69 = arith.constant 0 : index
    %127 = vector.load %arg9[%c0_68, %c0_69] : memref<1x32xf32, #tpu.memory_space<vmem>>, vector<1x32xf32>
    %128 = vector.broadcast %127 : vector<1x32xf32> to vector<8x32xf32>
    %129 = arith.mulf %128, %126 : vector<8x32xf32>
    %c0_70 = arith.constant 0 : index
    %c0_71 = arith.constant 0 : index
    %130 = vector.load %arg10[%c0_70, %c0_71] : memref<1x32xf32, #tpu.memory_space<vmem>>, vector<1x32xf32>
    %131 = vector.broadcast %130 : vector<1x32xf32> to vector<8x32xf32>
    %132 = arith.addf %129, %131 : vector<8x32xf32>
    %c0_72 = arith.constant 0 : index
    %c0_73 = arith.constant 0 : index
    %c0_74 = arith.constant 0 : index
    %133 = vector.load %arg11[%c0_72, %c0_73, %c0_74] : memref<1x8x32xf32, #tpu.memory_space<vmem>>, vector<1x8x32xf32>
    %134 = vector.shape_cast %133 : vector<1x8x32xf32> to vector<8x32xf32>
    %135 = vector.shape_cast %132 : vector<8x32xf32> to vector<1x8x32xf32>
    tpu.vector_store %arg11[%c0_72, %c0_73, %c0_74], %135 {strides = array<i32>} : memref<1x8x32xf32, #tpu.memory_space<vmem>>, vector<1x8x32xf32>,
    return
  }
  func.func @transform_0(%arg0: i32, %arg1: i32) -> (i32, i32, i32) {
    %c0_i32 = arith.constant 0 : i32
    %c0_i32_0 = arith.constant 0 : i32
    %c0_i32_1 = arith.constant 0 : i32
    return %arg0, %c0_i32, %c0_i32_0 : i32, i32, i32
  }
  func.func @transform_1(%arg0: i32, %arg1: i32) -> (i32, i32) {
    %c0_i32 = arith.constant 0 : i32
    %c0_i32_0 = arith.constant 0 : i32
    %c0_i32_1 = arith.constant 0 : i32
    return %c0_i32, %c0_i32_0 : i32, i32
  }
  func.func @transform_2(%arg0: i32, %arg1: i32) -> (i32, i32) {
    %c0_i32 = arith.constant 0 : i32
    %c0_i32_0 = arith.constant 0 : i32
    %c0_i32_1 = arith.constant 0 : i32
    return %c0_i32, %c0_i32_0 : i32, i32
  }
  func.func @transform_3(%arg0: i32, %arg1: i32) -> (i32, i32) {
    %c0_i32 = arith.constant 0 : i32
    %c0_i32_0 = arith.constant 0 : i32
    %c0_i32_1 = arith.constant 0 : i32
    return %c0_i32, %c0_i32_0 : i32, i32
  }
  func.func @transform_4(%arg0: i32, %arg1: i32) -> (i32, i32) {
    %c0_i32 = arith.constant 0 : i32
    %c0_i32_0 = arith.constant 0 : i32
    %c0_i32_1 = arith.constant 0 : i32
    return %c0_i32, %c0_i32_0 : i32, i32
  }
  func.func @transform_5(%arg0: i32, %arg1: i32) -> (i32, i32) {
    %c0_i32 = arith.constant 0 : i32
    %c0_i32_0 = arith.constant 0 : i32
    %c0_i32_1 = arith.constant 0 : i32
    return %c0_i32, %c0_i32_0 : i32, i32
  }
  func.func @transform_6(%arg0: i32, %arg1: i32) -> (i32, i32) {
    %c0_i32 = arith.constant 0 : i32
    %c0_i32_0 = arith.constant 0 : i32
    %c0_i32_1 = arith.constant 0 : i32
    return %c0_i32, %c0_i32_0 : i32, i32
  }
  func.func @transform_7(%arg0: i32, %arg1: i32) -> (i32, i32) {
    %c0_i32 = arith.constant 0 : i32
    %c0_i32_0 = arith.constant 0 : i32
    %c0_i32_1 = arith.constant 0 : i32
    return %c0_i32, %c0_i32_0 : i32, i32
  }
  func.func @transform_8(%arg0: i32, %arg1: i32) -> (i32, i32) {
    %c0_i32 = arith.constant 0 : i32
    %c0_i32_0 = arith.constant 0 : i32
    %c0_i32_1 = arith.constant 0 : i32
    return %c0_i32, %c0_i32_0 : i32, i32
  }
  func.func @transform_9(%arg0: i32, %arg1: i32) -> (i32, i32, i32) {
    %c0_i32 = arith.constant 0 : i32
    %c0_i32_0 = arith.constant 0 : i32
    return %arg0, %arg1, %c0_i32 : i32, i32, i32
  }
}

</mosaic_0001>

<bundles_post_ra>
// kernel: tpu_custom_call.1
= control target key start
LH: loop header
LB: loop body
LE: loop exit
PB: predicated region body
PF: predicated region fallthrough
CT: control target
= control target key end

     0   :  { %s1720_s0 = inlined_call_operand.hbm [shape: f32[2,8,32], index: 0, kind: input, shape index: {}]   ;;  %s1721_s1 = inlined_call_operand.hbm [shape: bf16[32,32], index: 1, kind: input, shape index: {}]   ;;  %s1722_s2 = inlined_call_operand.vmem [shape: f32[1,32], index: 2, kind: input, shape index: {}]   ;;  %s1723_s3 = inlined_call_operand.hbm [shape: bf16[32,64], index: 3, kind: input, shape index: {}]   ;;  %s1724_s4 = inlined_call_operand.vmem [shape: f32[1,64], index: 4, kind: input, shape index: {}]   ;;  %s1725_s5 = inlined_call_operand.hbm [shape: bf16[32,32], index: 5, kind: input, shape index: {}]   ;;  %s1726_s6 = inlined_call_operand.vmem [shape: f32[1,32], index: 6, kind: input, shape index: {}]   ;;  %s1727_s7 = inlined_call_operand.vmem [shape: f32[1,32], index: 7, kind: input, shape index: {}]   ;;  %s1728_s8 = inlined_call_operand.vmem [shape: f32[1,32], index: 8, kind: input, shape index: {}]   ;;  %s1729_s9 = inlined_call_operand.hbm [shape: f32[2,8,32], index: 9, kind: output, shape index: {}]  }
   0x1   :  { %1732 = sst [smem:[#allocation18_spill]] %s1721_s1 }
   0x2   :  { %1733 = sst [smem:[#allocation19_spill]] %s1723_s3 }
   0x3   :  { %1734 = sst [smem:[#allocation20_spill]] %s1725_s5 }
   0x4   :  { %14 = vsyncpa [#allocation5], 0 }
   0x5   :  { %16 = vsyncpa [#allocation5 + $0x1], 0 }
   0x6   :  { %17 = vsyncpa [#allocation8], 0 }
   0x7   :  { %18 = vsyncpa [#allocation11], 0 }
   0x8   :  { %19 = vsyncpa [#allocation6], 0 }
   0x9   :  { %21 = vsyncpa [#allocation6 + $0x1], 0  ;;  %s1473_s30 = smov 0   ;;  %s1475_s10 = smov 0  }
   0xa   :  { %s1477_s11 = smov 0   ;;  %s1479_s12 = smov 0  }
   0xb   :  { %s1481_s13 = smov 0   ;;  %s1483_s14 = smov 0  }
   0xc LB: > { %s1730_s15 = sadd.s32 4294967295, %s1405_s14   ;;  %p1006_p0 = scmp.ge.s32.totalorder %s1405_s14, 1  ;;  %s1405_s14 = sphi %s1483_s14, %s27_s14   ;;  %s1401_s13 = sphi %s1481_s13, %s1752_s13   ;;  %s1397_s12 = sphi %s1479_s12, %s1751_s12   ;;  %s1393_s11 = sphi %s1477_s11, %s1750_s11   ;;  %s1389_s10 = sphi %s1475_s10, %s1749_s10   ;;  %s1385_s30 = sphi %s1473_s30, %s1748_s30  }
   0xd   : > { %p1507_p1 = scmp.eq.s32.totalorder %s1730_s15, 0  ;;  %p266_p2 = scmp.lt.s32.totalorder %s1405_s14, 3 }
   0xe   : > { %s1736_s1 = sld [smem:[#allocation18_spill]]  ;;  %s1407_s21 = smov [#allocation7]  }
   0xf   : > { %p1515_p3 = pnand %p1006_p0, %p266_p2  ;;  %s279_s22 = sshll.u32 %s1407_s21, 4  ;;  %s280_s22 = int_to_ptr.vmem [resolvable:$true] %s279_s22 }
  0x10   : > { %p1010_p6 = scmp.ge.s32.totalorder %s1405_s14, 2  ;;  %s1739_s3 = sld [smem:[#allocation19_spill]] }
  0x11   : > { %p1080_p4 = pneg %p1515_p3  ;;  %s1408_s27 = smov 64  }
  0x12   : > { %s1409_s28 = smov 4   ;;  %s1410_s29 = smov [#allocation9]  }
  0x13   : > { %p1523_p5 = pnand %p1080_p4, %p1507_p1  ;;  %s296_s17 = sshll.u32 %s1410_s29, 4  ;;  %s297_s17 = int_to_ptr.vmem [resolvable:$true] %s296_s17 }
  0x14   : > { %s277_s19 = sshll.u32 %s1736_s1, 4  ;;  %s1740_s5 = sld [smem:[#allocation20_spill]]  ;;  %s278_s19 = int_to_ptr.hbm [resolvable:$true] %s277_s19 }
  0x15   : > { %1083 = dma.hbm_to_vmem [thread:$0]  (!%p1523_p5), %s278_s19, 256, %s280_s22, [#allocation8], %s1408_s27, %s1408_s27, %s1409_s28  }
  0x16   : > { %s294_s26 = sshll.u32 %s1739_s3, 4  ;;  %s1411_s25 = smov [#allocation10]   ;;  %s295_s26 = int_to_ptr.hbm [resolvable:$true] %s294_s26 }
  0x17   : > { %1086 = dma.hbm_to_vmem [thread:$0]  (!%p1523_p5), %s295_s26, 256, %s297_s17, [#allocation8], %s1408_s27, %s1408_s27, %s1409_s28  }
  0x18   : > { %s313_s15 = sshll.u32 %s1411_s25, 4  ;;  %s1005_s19 = sadd.s32 4294967294, %s1405_s14   ;;  %s314_s15 = int_to_ptr.vmem [resolvable:$true] %s313_s15 }
  0x19   : > { %s39_s22 = sadd.s32 1, %s1401_s13  ;;  %s46_s29 = sadd.s32 1, %s1393_s11 }
  0x1a   : > { %s311_s24 = sshll.u32 %s1740_s5, 4  ;;  %p41_p7 = scmp.ge.s32.totalorder %s39_s22, 2  ;;  %s312_s24 = int_to_ptr.hbm [resolvable:$true] %s311_s24 }
  0x1b   : > { %1089 = dma.hbm_to_vmem [thread:$0]  (!%p1523_p5), %s312_s24, 256, %s314_s15, [#allocation11], %s1408_s27, %s1408_s27, %s1409_s28  }
  0x1c   : > { %p53_p8 = scmp.ne.s32.totalorder %s1393_s11, %s1389_s10  ;;  %p54_p9 = scmp.eq.s32.totalorder %s1405_s14, 0 }
  0x1d   : > { %p59_p10 = scmp.ne.s32.totalorder %s1389_s10, %s1385_s30  ;;  %s1754_s22 = smov (%p41_p7, %s39_s22), 0 }
  0x1e   : > { %1741 = sst [smem:[#allocation17_spill]] %s1754_s22  ;;  %p1550_p11 = por %p54_p9, %p53_p8 }
  0x1f   : > { %p1556_p12 = por %p1507_p1, %p59_p10  ;;  %s43_s23 = ssub.s32 %s1401_s13, %s1754_s22 }
  0x20   : > { %s1744_s27 = sadd.s32 4294967295, %s1405_s14   ;;  %p44_p0 = scmp.eq.s32.totalorder %s43_s23, 0 }
  0x21   : > { %p253_p13 = scmp.eq.s32.totalorder %s1744_s27, 1  ;;  %p259_p2 = scmp.eq.s32.totalorder %s1005_s19, 1 }
  0x22   : > { %p1101_p5 = scmp.lt.s32.totalorder %s1405_s14, 2  ;;  %s336_s21 = sand.u32 1, %s1393_s11  }
  0x23   : > { %p1564_p4 = por %p253_p13, %p53_p8  ;;  %p1572_p7 = por %p259_p2, %p59_p10 }
  0x24   : > { %s1570_s17 = scalar_select %p44_p0, %s1393_s11, %s46_s29  }
  0x25   : > { %s1011_s24 = sshll.u32 %s336_s21, 3  ;;  %s1012_s25 = sshll.u32 %s1401_s13, 3 }
  0x26   : > { %s344_s27 = scalar_lea.hbm %s1720_s0, %s1012_s25  ;;  %s340_s23 = scalar_lea.vmem [#allocation4], %s1011_s24 }
  0x27   : > { %s348_s19 = sshll.u32 %s340_s23, 4  ;;  %s346_s5 = sshll.u32 %s344_s27, 4  ;;  %s349_s19 = int_to_ptr.vmem [resolvable:$true] %s348_s19  ;;  %s347_s5 = int_to_ptr.hbm [resolvable:$true] %s346_s5 }
  0x28   : > { %p1091_p8 = pnand %p1101_p5, %p1550_p11  ;;  %s337_s29 = scalar_lea.sflag [#allocation5], %s336_s21 }
  0x29   : > { %357 = sbr.rel (%p1515_p3) target bundleno = 1441 (0x5a1), region = 56  ;;  %s1586_s22 = sand.u32 (!%p1515_p3), 1, %s1389_s10  }
  0x2a   : > { %1093 = dma.hbm_to_vmem [thread:$0]  (!%p1091_p8), %s347_s5, 128, %s349_s19, %s337_s29  }
  0x2b   : > { %s1014_s1 = sshll.u32 (!%p1515_p3), %s1586_s22, 3  ;;  %s360_s3 = scalar_lea.sflag (!%p1515_p3), [#allocation5], %s1586_s22 }
  0x2c   : > { %s363_s24 = scalar_lea.vmem (!%p1515_p3), [#allocation4], %s1014_s1 }
  0x2e   : > { %1368 = dma.done.wait (%p1556_p12), %s360_s3, 128  }
  0x2f   : > { %1370 = vsyncadd (%p1556_p12), %s360_s3, 4294967168 }
  0x30   : > { %1372 = dma.done.wait (%p1507_p1), [#allocation8], 512  }
  0x31   : > { %1374 = vsyncadd (%p1507_p1), [#allocation8], 4294966784 }
  0x32   : > { %1376 = dma.done.wait (%p1507_p1), [#allocation11], 256  }
  0x33   : > { %1378 = vsyncadd (%p1507_p1), [#allocation11], 4294967040  ;;  %v1059_v0 = vld [vmem:[#allocation9 + $0x8] sm:$0xff]  ;;  %v1058_v1 = vld [vmem:[#allocation9] sm:$0xff]  ;;  %vm441_vm0 = vcmask 261120   ;;  %vm459_vm1 = vcmask 60416  }
  0x34   : > { %v1061_v2 = vld [vmem:[#allocation7 + $0x8] sm:$0xff]  ;;  %451 = vmatpush.bf16.msra.mxu0 %v1059_v0  ;;  %v1604_v3 = vld [vmem:[%s363_s24] sm:$0xff]  ;;  %v1060_v4 = vld [vmem:[#allocation7] sm:$0xff]  ;;  %s1412_s15 = smov 104   ;;  %s1413_s21 = smov 120   ;;  %vm542_vm2 = vcmask 64512  }
  0x35   : > { %531 = vmatpush.bf16.msra.mxu1 %v1061_v2  ;;  %v420_v5 = vpack.c.bf16 %v1604_v3, %v1604_v3  ;;  %v1170_v6 = vld [vmem:[%s1724_s4] ss:$0 sm:$0xff]  ;;  %s1414_s25 = smov 112   ;;  %s1415_s27 = smov 88   ;;  %vm578_vm3 = vcmask 1043456   ;;  %vm665_vm4 = vcmask 126016  }
  0x36   : > { %v1171_v9 = vld [vmem:[%s1722_s2] ss:$0 sm:$0xff]  ;;  %s1416_s23 = smov 80   ;;  %s1417_s19 = smov 96   ;;  %vm731_vm5 = vcmask 191616   ;;  %vm797_vm6 = vcmask 257216  }
  0x37   : > { %s1418_s29 = smov 72   ;;  %s1419_s3 = smov 8  }
  0x38   : > { %452 = vmatpush.bf16.msra.mxu0 %v1058_v1  ;;  %s1420_s24 = smov 16   ;;  %s1421_s5 = smov 24  }
  0x39   : > { %532 = vmatpush.bf16.msra.mxu1 %v1060_v4  ;;  %s1055_s26 = sshll.u32 %s1397_s12, 3  ;;  %s413_s12 = scalar_lea.vmem [#allocation12], %s1014_s1 }
  0x3a   : > { %s1335_s1 = scalar_lea.hbm %s1729_s9, 16 }
  0x3b   : > { %1027 = vmatmul.msk.bf16.vlgmr.msra.gmra.mxu0 %vm441_vm0, %v420_v5 }
  0x3c   : > { %1036 = vmatmul.msk.bf16.vlgmr.msra.gmra.mxu1 %vm441_vm0, %v420_v5 }
  0xb8   : > { %v454_v7 = vpop.f32.mrf.mxu0 }
  0xb9   : > { %v455_v8 = vadd.f32 %v1170_v6, %v454_v7  ;;  %v534_v10 = vpop.f32.mrf.mxu1 }
  0xba   : > { %v535_v12 = vadd.f32 %v1171_v9, %v534_v10 }
  0xbb   : > { %v1616_v11 = vpack.c.bf16 %v455_v8, %v455_v8 }
  0xbc   : > { %v538_v14 = vpack.c.bf16 %v535_v12, %v535_v12 }
  0xbd   : > { %487 = vrot.lane.b32.xlu2 %v1616_v11, %s1412_s15  ;;  %467 = vrot.lane.b32.xlu1 %v1616_v11, %s1413_s21  ;;  %460 = vst.msk [vmem:[#allocation2] sm:$0xf] %vm459_vm1, %v1616_v11 }
  0xc0   : > { %v456_v13 = vpop.f32.mrf.mxu0 }
  0xc1   : > { %v536_v15 = vpop.f32.mrf.mxu1 }
  0xc4   : > { %v539_v16 = vld [vmem:[#allocation2] sm:$0xf] }
  0xc5   : > { %605 = vrot.lane.b32.xlu2 %v538_v14, %s1413_s21  ;;  %477 = vrot.lane.b32.xlu1 %v1616_v11, %s1414_s25  ;;  %v547_v17 = vsel %vm542_vm2, %v539_v16, 0 }
  0xc6   : > { %556 = vmatpush.bf16.xpose.msra.mxu2 %v547_v17 }
  0xcd   : > { %737 = vrot.lane.b32.xlu2 %v538_v14, %s1412_s15  ;;  %671 = vrot.lane.b32.xlu1 %v538_v14, %s1414_s25 }
  0xce   : > { %1037 = vmatmul.msk.bf16.vlgmr.msra.gmra.mxu2 %vm542_vm2, %v538_v14 }
  0xd5   : > { %472 = vrot.lane.b32.xlu2 %v1616_v11, %s1415_s27 }
  0xdd   : > { %482 = vrot.lane.b32.xlu2 %v1616_v11, %s1416_s23  ;;  %s889_s23 = scalar_lea.hbm %s1729_s9, %s1055_s26 }
 0x117   : > { %v488_v18 = vpop.permute.xlu2 %487 }
 0x118   : > { %491 = vst.msk [vmem:[#allocation2 + $0xc] sm:$0xf] %vm459_vm1, %v488_v18 }
 0x11f   : > { %v606_v19 = vpop.permute.xlu2 %605  ;;  %v734_v49 = vld [vmem:[#allocation2 + $0xc] sm:$0xf] }
 0x120   : > { %v743_v51 = vsel %vm542_vm2, %v734_v49, 0 }
 0x127   : > { %v738_v20 = vpop.permute.xlu2 %737 }
 0x12f   : > { %v473_v21 = vpop.permute.xlu2 %472  ;;  %v468_v22 = vpop.permute.xlu1 %467 }
 0x130   : > { %476 = vst.msk [vmem:[#allocation2 + $0x14] sm:$0xf] %vm459_vm1, %v473_v21 }
 0x131   : > { %471 = vst.msk [vmem:[#allocation2 + $0x4] sm:$0xf] %vm459_vm1, %v468_v22 }
 0x137   : > { %v483_v23 = vpop.permute.xlu2 %482  ;;  %v478_v24 = vpop.permute.xlu1 %477  ;;  %v603_v25 = vld [vmem:[#allocation2 + $0x14] sm:$0xf] }
 0x138   : > { %486 = vst.msk [vmem:[#allocation2 + $0x18] sm:$0xf] %vm459_vm1, %v483_v23  ;;  %v643_v26 = vsel %vm578_vm3, %v603_v25, 0  ;;  %v601_v44 = vld [vmem:[#allocation2 + $0x4] sm:$0xf] }
 0x139   : > { %481 = vst.msk [vmem:[#allocation2 + $0x8] sm:$0xf] %vm459_vm1, %v478_v24  ;;  %652 = vmatpush.bf16.msrb.mxu0 %v643_v26  ;;  %v611_v48 = vsel %vm542_vm2, %v601_v44, 0 }
 0x13f   : > { %v670_v27 = vld [vmem:[#allocation2 + $0x18] sm:$0xf]  ;;  %v672_v31 = vpop.permute.xlu1 %671 }
 0x140   : > { %v668_v28 = vld [vmem:[#allocation2 + $0x8] sm:$0xf]  ;;  %v709_v29 = vsel %vm578_vm3, %v670_v27, 0 }
 0x141   : > { %v677_v30 = vsel %vm542_vm2, %v668_v28, 0  ;;  %718 = vmatpush.bf16.msrb.mxu2 %v709_v29 }
 0x142   : > { %686 = vmatpush.bf16.xpose.msrb.mxu1 %v677_v30 }
 0x149   : > { %1041 = vmatmul.msk.bf16.vlgmr.msrb.gmra.mxu1 %vm542_vm2, %v672_v31 }
 0x151   : > { %v558_v32 = vpop.f32.mrf.mxu2 }
 0x152   : > { %v562_v33 = vsel %vm542_vm2, %v558_v32, -inf }
 0x153   : > { %563 = vmax.xlane.f32.xlu0 %v562_v33 }
 0x159   : > { %v560_v34 = vpop.f32.mrf.mxu2 }
 0x167   : > { %462 = vrot.lane.b32.xlu0 %v1616_v11, %s1417_s19 }
 0x1c6   : > { %v688_v35 = vpop.f32.mrf.mxu1  ;;  %v564_v37 = vpop.xlane.xlu0 %563 }
 0x1c7   : > { %v692_v36 = vsel %vm542_vm2, %v688_v35, -inf  ;;  %v565_v38 = vsub.f32 %v558_v32, %v564_v37 }
 0x1c8   : > { %693 = vmax.xlane.f32.xlu0 %v692_v36 }
 0x1c9   : > { %v566_v40 = vpack.c.bf16 %v565_v38, %v565_v38 }
 0x1cb   : > { %v567_v41 = vunpack.c.l.bf16 %v566_v40 }
 0x1cd   : > { %v568_v42 = vmul.f32 1.442695, %v567_v41 }
 0x1ce   : > { %v690_v39 = vpop.f32.mrf.mxu1 }
 0x1cf   : > { %1175 = vpow2.f32 %v568_v42 }
 0x1d5   : > { %v1176_v45 = vpop.eup %1175 }
 0x1d6   : > { %v1642_v50 = vpack.c.bf16 %v1176_v45, %v1176_v45 }
 0x1d8   : > { %v571_v27 = vunpack.c.l.bf16 %v1642_v50 }
 0x1d9   : > { %v463_v43 = vpop.permute.xlu0 %462 }
 0x1da   : > { %466 = vst.msk [vmem:[#allocation2 + $0x10] sm:$0xf] %vm459_vm1, %v463_v43  ;;  %v572_v30 = vsel %vm542_vm2, %v571_v27, 0.0 }
 0x1e1   : > { %v541_v46 = vld [vmem:[#allocation2 + $0x10] sm:$0xf] }
 0x1e2   : > { %v580_v47 = vsel %vm578_vm3, %v541_v46, 0 }
 0x1e3   : > { %589 = vmatpush.bf16.msra.mxu3 %v580_v47 }
 0x1e6   : > { %1038 = vmatmul.msk.bf16.vlgmr.msra.gmra.mxu3 %vm542_vm2, %v1642_v50 }
 0x1e7   : > { %620 = vmatpush.bf16.xpose.msrb.mxu3 %v611_v48 }
 0x1ef   : > { %752 = vmatpush.bf16.xpose.msra.mxu3 %v743_v51 }
 0x1f6   : > { %1039 = vmatmul.msk.bf16.vlgmr.msrb.gmra.mxu3 %vm542_vm2, %v606_v19 }
 0x206   : > { %1043 = vmatmul.msk.bf16.vlgmr.msra.gmra.mxu3 %vm542_vm2, %v738_v20 }
 0x23b   : > { %v694_v52 = vpop.xlane.xlu0 %693 }
 0x23c   : > { %v695_v53 = vsub.f32 %v688_v35, %v694_v52  ;;  %v1063_v52 = vld [vmem:[#allocation10 + $0x8] sm:$0xff] }
 0x23d   : > { %829 = vmatpush.bf16.msra.mxu1 %v1063_v52 }
 0x23e   : > { %v696_v54 = vpack.c.bf16 %v695_v53, %v695_v53  ;;  %v1062_v53 = vld [vmem:[#allocation10] sm:$0xff] }
 0x240   : > { %v697_v55 = vunpack.c.l.bf16 %v696_v54 }
 0x241   : > { %830 = vmatpush.bf16.msra.mxu1 %v1062_v53 }
 0x242   : > { %v698_v56 = vmul.f32 1.442695, %v697_v55 }
 0x244   : > { %1177 = vpow2.f32 %v698_v56 }
 0x24a   : > { %v1178_v57 = vpop.eup %1177 }
 0x24b   : > { %v700_v58 = vpack.c.bf16 %v1178_v57, %v1178_v57  ;;  %v1172_v57 = vld [vmem:[%s1726_s6] ss:$0 sm:$0xff] }
 0x24d   : > { %1042 = vmatmul.msk.bf16.vlgmr.msrb.gmra.mxu2 %vm542_vm2, %v700_v58  ;;  %v701_v21 = vunpack.c.l.bf16 %v700_v58 }
 0x24f   : > { %v702_v22 = vsel %vm542_vm2, %v701_v21, 0.0 }
 0x269   : > { %v1650_v59 = vpop.f32.mrf.mxu3 }
 0x271   : > { %v593_v60 = vpop.f32.mrf.mxu3 }
 0x279   : > { %v622_v61 = vpop.f32.mrf.mxu3 }
 0x27a   : > { %v626_v62 = vsel %vm542_vm2, %v622_v61, -inf }
 0x27b   : > { %627 = vmax.xlane.f32.xlu1 %v626_v62 }
 0x281   : > { %v624_v63 = vpop.f32.mrf.mxu3 }
 0x282   : > { %v1422_v63 = vmov 32.0  }
 0x289   : > { %v754_v0 = vpop.f32.mrf.mxu3 }
 0x28a   : > { %v758_v1 = vsel %vm542_vm2, %v754_v0, -inf }
 0x28b   : > { %759 = vmax.xlane.f32.xlu2 %v758_v1 }
 0x291   : > { %v756_v2 = vpop.f32.mrf.mxu3 }
 0x294   : > { %492 = vrot.lane.b32.xlu1 %v1616_v11, %s1418_s29 }
 0x2d0   : > { %v720_v4 = vpop.f32.mrf.mxu2 }
 0x2d8   : > { %v722_v5 = vpop.f32.mrf.mxu2 }
 0x2ee   : > { %v628_v6 = vpop.xlane.xlu1 %627 }
 0x2ef   : > { %v629_v7 = vsub.f32 %v622_v61, %v628_v6 }
 0x2f1   : > { %v630_v8 = vpack.c.bf16 %v629_v7, %v629_v7 }
 0x2f3   : > { %v631_v9 = vunpack.c.l.bf16 %v630_v8 }
 0x2f5   : > { %v632_v10 = vmul.f32 1.442695, %v631_v9 }
 0x2f7   : > { %1179 = vpow2.f32 %v632_v10 }
 0x2fd   : > { %v1180_v12 = vpop.eup %1179 }
 0x2fe   : > { %v634_v13 = vpack.c.bf16 %v1180_v12, %v1180_v12  ;;  %v760_v14 = vpop.xlane.xlu2 %759 }
 0x2ff   : > { %v761_v15 = vsub.f32 %v754_v0, %v760_v14 }
 0x300   : > { %1040 = vmatmul.msk.bf16.vlgmr.msrb.gmra.mxu0 %vm542_vm2, %v634_v13  ;;  %v635_v16 = vunpack.c.l.bf16 %v634_v13 }
 0x301   : > { %v762_v17 = vpack.c.bf16 %v761_v15, %v761_v15 }
 0x302   : > { %v636_v18 = vsel %vm542_vm2, %v635_v16, 0.0 }
 0x303   : > { %v763_v19 = vunpack.c.l.bf16 %v762_v17  ;;  %637 = vadd.xlane.f32.xlu0 %v636_v18 }
 0x305   : > { %v764_v11 = vmul.f32 1.442695, %v763_v19 }
 0x306   : > { %v493_v20 = vpop.permute.xlu1 %492 }
 0x307   : > { %1181 = vpow2.f32 %v764_v11  ;;  %496 = vst.msk [vmem:[#allocation2 + $0x1c] sm:$0xf] %vm459_vm1, %v493_v20  ;;  %v1173_v20 = vld [vmem:[%s1727_s7] ss:$0 sm:$0xff] }
 0x30b   : > { %703 = vadd.xlane.f32.xlu0 %v702_v22 }
 0x30d   : > { %v1182_v23 = vpop.eup %1181 }
 0x30e   : > { %v766_v24 = vpack.c.bf16 %v1182_v23, %v1182_v23  ;;  %v736_v25 = vld [vmem:[#allocation2 + $0x1c] sm:$0xf]  ;;  %v1174_v23 = vld [vmem:[%s1728_s8] ss:$0 sm:$0xff] }
 0x30f   : > { %v775_v26 = vsel %vm578_vm3, %v736_v25, 0 }
 0x310   : > { %784 = vmatpush.bf16.msra.mxu0 %v775_v26  ;;  %v767_v28 = vunpack.c.l.bf16 %v766_v24 }
 0x312   : > { %v768_v29 = vsel %vm542_vm2, %v767_v28, 0.0 }
 0x313   : > { %1044 = vmatmul.msk.bf16.vlgmr.msra.gmra.mxu0 %vm542_vm2, %v766_v24  ;;  %769 = vadd.xlane.f32.xlu2 %v768_v29 }
 0x314   : > { %573 = vadd.xlane.f32.xlu0 %v572_v30 }
 0x376   : > { %v638_v31 = vpop.xlane.xlu0 %637 }
 0x377   : > { %1183 = vrcp.f32 %v638_v31 }
 0x37d   : > { %v1184_v32 = vpop.eup %1183  ;;  %v654_v33 = vpop.f32.mrf.mxu0 }
 0x37e   : > { %v659_v34 = vmul.f32 %v1184_v32, %v654_v33  ;;  %v704_v35 = vpop.xlane.xlu0 %703 }
 0x37f   : > { %1185 = vrcp.f32 %v704_v35 }
 0x380   : > { %v660_v36 = vpack.c.bf16 %v659_v34, %v659_v34 }
 0x382   : > { %662 = vrot.lane.b32.xlu2 %v660_v36, %s1419_s3  ;;  %s891_s3 = sshll.u32 %s413_s12, 4  ;;  %s892_s3 = int_to_ptr.vmem [resolvable:$true] %s891_s3 }
 0x385   : > { %v1186_v37 = vpop.eup %1185  ;;  %v656_v38 = vpop.f32.mrf.mxu0 }
 0x386   : > { %v725_v39 = vmul.f32 %v1186_v37, %v720_v4  ;;  %v770_v40 = vpop.xlane.xlu2 %769 }
 0x387   : > { %v574_v41 = vpop.xlane.xlu0 %573 }
 0x388   : > { %1187 = vrcp.f32 %v574_v41  ;;  %v726_v42 = vpack.c.bf16 %v725_v39, %v725_v39 }
 0x389   : > { %1189 = vrcp.f32 %v770_v40 }
 0x38a   : > { %728 = vrot.lane.b32.xlu1 %v726_v42, %s1420_s24  ;;  %1191 = vrcp.f32 %v1422_v63  ;;  %s893_s24 = sshll.u32 %s889_s23, 4  ;;  %s894_s24 = int_to_ptr.hbm [resolvable:$true] %s893_s24 }
 0x38b   : > { %s1329_s16 = sshra.s32 %s894_s24, 4  ;;  %s1330_s16 = int_to_ptr.hbm [resolvable:$true] %s1329_s16 }
 0x38c   : > { %s1331_s20 = scalar_lea.hbm %s1330_s16, 8  ;;  %p1336_p10 = scmp.lt.s32.totalorder %s1330_s16, %s1729_s9 }
 0x38d   : > { %p1332_p1 = scmp.ne.s32.totalorder %s1330_s16, %s1331_s20  ;;  %p1337_p11 = scmp.lt.s32.totalorder %s1335_s1, %s1331_s20 }
 0x38e   : > { %v1188_v43 = vpop.eup %1187 }
 0x38f   : > { %v596_v44 = vmul.f32 %v1188_v43, %v1650_v59  ;;  %v1190_v45 = vpop.eup %1189  ;;  %p1333_p3 = pnand %p1332_p1, %p1564_p4  ;;  %p1338_p12 = por %p1337_p11, %p1336_p10 }
 0x390   : > { %v786_v46 = vpop.f32.mrf.mxu0  ;;  %v1192_v0 = vpop.eup %1191 }
 0x391   : > { %v597_v47 = vpack.c.bf16 %v596_v44, %v596_v44  ;;  %v791_v48 = vmul.f32 %v1190_v45, %v786_v46  ;;  %v841_v1 = vmul.f32 32.0, %v1192_v0  ;;  %vm845_vm7 = vweird.f32 %v1192_v0  ;;  %p1334_p9 = pneg %p1333_p3 }
 0x393   : > { %599 = vst.msk [vmem:[#allocation3] sm:$0xf] %vm459_vm1, %v597_v47  ;;  %v792_v49 = vpack.c.bf16 %v791_v48, %v791_v48  ;;  %v842_v2 = vsub.f32 1.0, %v841_v1  ;;  %p1339_p13 = pnand %p1338_p12, %p1334_p9 }
 0x395   : > { %794 = vrot.lane.b32.xlu0 %v792_v49, %s1421_s5  ;;  %v843_v4 = vmul.f32 %v1192_v0, %v842_v2  ;;  %s878_s5 = scalar_lea.sflag [#allocation6], %s1586_s22 }
 0x397   : > { %v844_v5 = vadd.f32 %v1192_v0, %v843_v4 }
 0x398   : > { %v788_v50 = vpop.f32.mrf.mxu0 }
 0x399   : > { %v846_v6 = vsel %vm845_vm7, %v1192_v0, %v844_v5 }
 0x3dc   : > { %v663_v51 = vpop.permute.xlu2 %662 }
 0x3dd   : > { %666 = vst.msk [vmem:[#allocation3] sm:$0xf] %vm665_vm4, %v663_v51 }
 0x3fc   : > { %v729_v54 = vpop.permute.xlu1 %728 }
 0x3fd   : > { %732 = vst.msk [vmem:[#allocation3] sm:$0xf] %vm731_vm5, %v729_v54 }
 0x407   : > { %v795_v55 = vpop.permute.xlu0 %794 }
 0x408   : > { %798 = vst.msk [vmem:[#allocation3] sm:$0xf] %vm797_vm6, %v795_v55 }
 0x40f   : > { %v799_v56 = vld [vmem:[#allocation3] sm:$0xf] }
 0x410   : > { %1053 = vmatmul.msk.bf16.vlgmr.msra.gmra.mxu1 %vm441_vm0, %v799_v56 }
 0x48d   : > { %v832_v58 = vpop.f32.mrf.mxu1 }
 0x48e   : > { %v833_v59 = vadd.f32 %v1172_v57, %v832_v58 }
 0x490   : > { %v836_v60 = vadd.f32 %v833_v59, %v1604_v3 }
 0x492   : > { %v837_v61 = vsel %vm441_vm0, %v836_v60, 0.0 }
 0x493   : > { %838 = vadd.xlane.f32.xlu1 %v837_v61 }
 0x495   : > { %v834_v62 = vpop.f32.mrf.mxu1 }
 0x506   : > { %v839_v7 = vpop.xlane.xlu1 %838 }
 0x507   : > { %v847_v8 = vmul.f32 %v846_v6, %v839_v7 }
 0x509   : > { %v848_v9 = vsub.f32 %v836_v60, %v847_v8 }
 0x50b   : > { %v849_v10 = vmul.f32 %v848_v9, %v848_v9 }
 0x50d   : > { %v850_v3 = vsel %vm441_vm0, %v849_v10, 0.0 }
 0x50e   : > { %851 = vadd.xlane.f32.xlu2 %v850_v3 }
 0x581   : > { %v852_v12 = vpop.xlane.xlu2 %851 }
 0x582   : > { %v853_v13 = vmul.f32 %v852_v12, %v846_v6 }
 0x584   : > { %v854_v14 = vadd.f32 1e-05, %v853_v13 }
 0x586   : > { %1193 = vrsqrt.f32 %v854_v14  ;;  %vm861_vm9 = vweird.f32 %v854_v14 }
 0x58c   : > { %v1194_v15 = vpop.eup %1193 }
 0x58d   : > { %v856_v16 = vmul.f32 %v1194_v15, %v854_v14  ;;  %vm862_vm8 = vweird.f32 %v1194_v15 }
 0x58e   : > { %vm863_vm10 = vmor %vm861_vm9, %vm862_vm8 }
 0x58f   : > { %v857_v17 = vmul.f32 %v1194_v15, %v856_v16 }
 0x591   : > { %v858_v18 = vmul.f32 0.5, %v857_v17 }
 0x593   : > { %v859_v19 = vsub.f32 1.5, %v858_v18 }
 0x595   : > { %v860_v11 = vmul.f32 %v1194_v15, %v859_v19 }
 0x597   : > { %v864_v21 = vsel %vm863_vm10, %v1194_v15, %v860_v11 }
 0x598   : > { %v865_v22 = vmul.f32 %v864_v21, %v848_v9 }
 0x59a   : > { %v870_v24 = vmul.f32 %v1173_v20, %v865_v22 }
 0x59c   : > { %v875_v25 = vadd.f32 %v1174_v23, %v870_v24 }
 0x59e   : > { %876 = vst.msk [vmem:[%s413_s12] sm:$0xff] %vm441_vm0, %v875_v25 }
 0x59f   : > { %1342 = shalt.err (!%p1339_p13)
}
 0x5a0   : > { %1078 = dma.vmem_to_hbm [thread:$0]  (%p1564_p4), %s892_s3, 128, %s894_s24, %s878_s5  }
 0x5a1 PF: > { %s905_s22 = sand.u32 1, %s1385_s30   ;;  %p1095_p0 = pnand %p1010_p6, %p1572_p7 }
 0x5a2   : > { %s906_s27 = scalar_lea.sflag [#allocation6], %s905_s22 }
 0x5a3   : > { %p1096_p2 = pneg %p1095_p0 }
 0x5a5   : > { %1380 = dma.done.wait (%p1096_p2), %s906_s27, 128  }
 0x5a6   : > { %1382 = vsyncadd (%p1096_p2), %s906_s27, 4294967168  ;;  %s27_s14 = sadd.s32 1, %s1405_s14   ;;  %s1747_s28 = sld [smem:[#allocation17_spill]] }
 0x5a7   : > { %p24_p5 = scmp.ge.s32.totalorder %s27_s14, 4   ;;  %s1748_s30 = smov %s1389_s10 }
 0x5a8   : > { %s1749_s10 = smov %s1393_s11  ;;  %s1750_s11 = smov %s1570_s17 }
 0x5a9   : > { %s1751_s12 = smov %s1401_s13  ;;  %26 = sbr.rel (!%p24_p5) target bundleno = 12 (0xc), region = 132 }
 0x5ac   : > { %s1752_s13 = smov %s1747_s28 }
 0x5ae   :  { %912 = vsyncpa [#allocation5], 1 }
 0x5af   :  { %914 = vsyncpa [#allocation5 + $0x1], 1 }
 0x5b0   :  { %915 = vsyncpa [#allocation8], 1 }
 0x5b1   :  { %916 = vsyncpa [#allocation11], 1 }
 0x5b2   :  { %917 = vsyncpa [#allocation6], 1 }
 0x5b3   :  { %919 = vsyncpa [#allocation6 + $0x1], 1 }

// kernel: tpu_custom_call.1
= control target key start
LH: loop header
LB: loop body
LE: loop exit
PB: predicated region body
PF: predicated region fallthrough
CT: control target
= control target key end

     0   :  { %s1720_s0 = inlined_call_operand.hbm [shape: f32[2,8,32], index: 0, kind: input, shape index: {}]   ;;  %s1721_s1 = inlined_call_operand.hbm [shape: bf16[32,32], index: 1, kind: input, shape index: {}]   ;;  %s1722_s2 = inlined_call_operand.vmem [shape: f32[1,32], index: 2, kind: input, shape index: {}]   ;;  %s1723_s3 = inlined_call_operand.hbm [shape: bf16[32,64], index: 3, kind: input, shape index: {}]   ;;  %s1724_s4 = inlined_call_operand.vmem [shape: f32[1,64], index: 4, kind: input, shape index: {}]   ;;  %s1725_s5 = inlined_call_operand.hbm [shape: bf16[32,32], index: 5, kind: input, shape index: {}]   ;;  %s1726_s6 = inlined_call_operand.vmem [shape: f32[1,32], index: 6, kind: input, shape index: {}]   ;;  %s1727_s7 = inlined_call_operand.vmem [shape: f32[1,32], index: 7, kind: input, shape index: {}]   ;;  %s1728_s8 = inlined_call_operand.vmem [shape: f32[1,32], index: 8, kind: input, shape index: {}]   ;;  %s1729_s9 = inlined_call_operand.hbm [shape: f32[2,8,32], index: 9, kind: output, shape index: {}]  }
   0x1   :  { %1732 = sst [smem:[#allocation18_spill]] %s1721_s1 }
   0x2   :  { %1733 = sst [smem:[#allocation19_spill]] %s1723_s3 }
   0x3   :  { %1734 = sst [smem:[#allocation20_spill]] %s1725_s5 }
   0x4   :  { %14 = vsyncpa [#allocation5], 0 }
   0x5   :  { %16 = vsyncpa [#allocation5 + $0x1], 0 }
   0x6   :  { %17 = vsyncpa [#allocation8], 0 }
   0x7   :  { %18 = vsyncpa [#allocation11], 0 }
   0x8   :  { %19 = vsyncpa [#allocation6], 0 }
   0x9   :  { %21 = vsyncpa [#allocation6 + $0x1], 0  ;;  %s1473_s30 = smov 0   ;;  %s1475_s10 = smov 0  }
   0xa   :  { %s1477_s11 = smov 0   ;;  %s1479_s12 = smov 0  }
   0xb   :  { %s1481_s13 = smov 0   ;;  %s1483_s14 = smov 0  }
   0xc LB: > { %s1730_s15 = sadd.s32 4294967295, %s1405_s14   ;;  %p1006_p0 = scmp.ge.s32.totalorder %s1405_s14, 1  ;;  %s1405_s14 = sphi %s1483_s14, %s27_s14   ;;  %s1401_s13 = sphi %s1481_s13, %s1752_s13   ;;  %s1397_s12 = sphi %s1479_s12, %s1751_s12   ;;  %s1393_s11 = sphi %s1477_s11, %s1750_s11   ;;  %s1389_s10 = sphi %s1475_s10, %s1749_s10   ;;  %s1385_s30 = sphi %s1473_s30, %s1748_s30  }
   0xd   : > { %p1507_p1 = scmp.eq.s32.totalorder %s1730_s15, 0  ;;  %p266_p2 = scmp.lt.s32.totalorder %s1405_s14, 3 }
   0xe   : > { %s1736_s1 = sld [smem:[#allocation18_spill]]  ;;  %s1407_s21 = smov [#allocation7]  }
   0xf   : > { %p1515_p3 = pnand %p1006_p0, %p266_p2  ;;  %s279_s22 = sshll.u32 %s1407_s21, 4  ;;  %s280_s22 = int_to_ptr.vmem [resolvable:$true] %s279_s22 }
  0x10   : > { %p1010_p6 = scmp.ge.s32.totalorder %s1405_s14, 2  ;;  %s1739_s3 = sld [smem:[#allocation19_spill]] }
  0x11   : > { %p1080_p4 = pneg %p1515_p3  ;;  %s1408_s27 = smov 64  }
  0x12   : > { %s1409_s28 = smov 4   ;;  %s1410_s29 = smov [#allocation9]  }
  0x13   : > { %p1523_p5 = pnand %p1080_p4, %p1507_p1  ;;  %s296_s17 = sshll.u32 %s1410_s29, 4  ;;  %s297_s17 = int_to_ptr.vmem [resolvable:$true] %s296_s17 }
  0x14   : > { %s277_s19 = sshll.u32 %s1736_s1, 4  ;;  %s1740_s5 = sld [smem:[#allocation20_spill]]  ;;  %s278_s19 = int_to_ptr.hbm [resolvable:$true] %s277_s19 }
  0x15   : > { %1083 = dma.hbm_to_vmem [thread:$0]  (!%p1523_p5), %s278_s19, 256, %s280_s22, [#allocation8], %s1408_s27, %s1408_s27, %s1409_s28  }
  0x16   : > { %s294_s26 = sshll.u32 %s1739_s3, 4  ;;  %s1411_s25 = smov [#allocation10]   ;;  %s295_s26 = int_to_ptr.hbm [resolvable:$true] %s294_s26 }
  0x17   : > { %1086 = dma.hbm_to_vmem [thread:$0]  (!%p1523_p5), %s295_s26, 256, %s297_s17, [#allocation8], %s1408_s27, %s1408_s27, %s1409_s28  }
  0x18   : > { %s313_s15 = sshll.u32 %s1411_s25, 4  ;;  %s1005_s19 = sadd.s32 4294967294, %s1405_s14   ;;  %s314_s15 = int_to_ptr.vmem [resolvable:$true] %s313_s15 }
  0x19   : > { %s39_s22 = sadd.s32 1, %s1401_s13  ;;  %s46_s29 = sadd.s32 1, %s1393_s11 }
  0x1a   : > { %s311_s24 = sshll.u32 %s1740_s5, 4  ;;  %p41_p7 = scmp.ge.s32.totalorder %s39_s22, 2  ;;  %s312_s24 = int_to_ptr.hbm [resolvable:$true] %s311_s24 }
  0x1b   : > { %1089 = dma.hbm_to_vmem [thread:$0]  (!%p1523_p5), %s312_s24, 256, %s314_s15, [#allocation11], %s1408_s27, %s1408_s27, %s1409_s28  }
  0x1c   : > { %p53_p8 = scmp.ne.s32.totalorder %s1393_s11, %s1389_s10  ;;  %p54_p9 = scmp.eq.s32.totalorder %s1405_s14, 0 }
  0x1d   : > { %p59_p10 = scmp.ne.s32.totalorder %s1389_s10, %s1385_s30  ;;  %s1754_s22 = smov (%p41_p7, %s39_s22), 0 }
  0x1e   : > { %1741 = sst [smem:[#allocation17_spill]] %s1754_s22  ;;  %p1550_p11 = por %p54_p9, %p53_p8 }
  0x1f   : > { %p1556_p12 = por %p1507_p1, %p59_p10  ;;  %s43_s23 = ssub.s32 %s1401_s13, %s1754_s22 }
  0x20   : > { %s1744_s27 = sadd.s32 4294967295, %s1405_s14   ;;  %p44_p0 = scmp.eq.s32.totalorder %s43_s23, 0 }
  0x21   : > { %p253_p13 = scmp.eq.s32.totalorder %s1744_s27, 1  ;;  %p259_p2 = scmp.eq.s32.totalorder %s1005_s19, 1 }
  0x22   : > { %p1101_p5 = scmp.lt.s32.totalorder %s1405_s14, 2  ;;  %s336_s21 = sand.u32 1, %s1393_s11  }
  0x23   : > { %p1564_p4 = por %p253_p13, %p53_p8  ;;  %p1572_p7 = por %p259_p2, %p59_p10 }
  0x24   : > { %s1570_s17 = scalar_select %p44_p0, %s1393_s11, %s46_s29  }
  0x25   : > { %s1011_s24 = sshll.u32 %s336_s21, 3  ;;  %s1012_s25 = sshll.u32 %s1401_s13, 3 }
  0x26   : > { %s344_s27 = scalar_lea.hbm %s1720_s0, %s1012_s25  ;;  %s340_s23 = scalar_lea.vmem [#allocation4], %s1011_s24 }
  0x27   : > { %s348_s19 = sshll.u32 %s340_s23, 4  ;;  %s346_s5 = sshll.u32 %s344_s27, 4  ;;  %s349_s19 = int_to_ptr.vmem [resolvable:$true] %s348_s19  ;;  %s347_s5 = int_to_ptr.hbm [resolvable:$true] %s346_s5 }
  0x28   : > { %p1091_p8 = pnand %p1101_p5, %p1550_p11  ;;  %s337_s29 = scalar_lea.sflag [#allocation5], %s336_s21 }
  0x29   : > { %357 = sbr.rel (%p1515_p3) target bundleno = 1441 (0x5a1), region = 56  ;;  %s1586_s22 = sand.u32 (!%p1515_p3), 1, %s1389_s10  }
  0x2a   : > { %1093 = dma.hbm_to_vmem [thread:$0]  (!%p1091_p8), %s347_s5, 128, %s349_s19, %s337_s29  }
  0x2b   : > { %s1014_s1 = sshll.u32 (!%p1515_p3), %s1586_s22, 3  ;;  %s360_s3 = scalar_lea.sflag (!%p1515_p3), [#allocation5], %s1586_s22 }
  0x2c   : > { %s363_s24 = scalar_lea.vmem (!%p1515_p3), [#allocation4], %s1014_s1 }
  0x2e   : > { %1368 = dma.done.wait (%p1556_p12), %s360_s3, 128  }
  0x2f   : > { %1370 = vsyncadd (%p1556_p12), %s360_s3, 4294967168 }
  0x30   : > { %1372 = dma.done.wait (%p1507_p1), [#allocation8], 512  }
  0x31   : > { %1374 = vsyncadd (%p1507_p1), [#allocation8], 4294966784 }
  0x32   : > { %1376 = dma.done.wait (%p1507_p1), [#allocation11], 256  }
  0x33   : > { %1378 = vsyncadd (%p1507_p1), [#allocation11], 4294967040  ;;  %v1059_v0 = vld [vmem:[#allocation9 + $0x8] sm:$0xff]  ;;  %v1058_v1 = vld [vmem:[#allocation9] sm:$0xff]  ;;  %vm441_vm0 = vcmask 261120   ;;  %vm459_vm1 = vcmask 60416  }
  0x34   : > { %v1061_v2 = vld [vmem:[#allocation7 + $0x8] sm:$0xff]  ;;  %451 = vmatpush.bf16.msra.mxu0 %v1059_v0  ;;  %v1604_v3 = vld [vmem:[%s363_s24] sm:$0xff]  ;;  %v1060_v4 = vld [vmem:[#allocation7] sm:$0xff]  ;;  %s1412_s15 = smov 104   ;;  %s1413_s21 = smov 120   ;;  %vm542_vm2 = vcmask 64512  }
  0x35   : > { %531 = vmatpush.bf16.msra.mxu1 %v1061_v2  ;;  %v420_v5 = vpack.c.bf16 %v1604_v3, %v1604_v3  ;;  %v1170_v6 = vld [vmem:[%s1724_s4] ss:$0 sm:$0xff]  ;;  %s1414_s25 = smov 112   ;;  %s1415_s27 = smov 88   ;;  %vm578_vm3 = vcmask 1043456   ;;  %vm665_vm4 = vcmask 126016  }
  0x36   : > { %v1171_v9 = vld [vmem:[%s1722_s2] ss:$0 sm:$0xff]  ;;  %s1416_s23 = smov 80   ;;  %s1417_s19 = smov 96   ;;  %vm731_vm5 = vcmask 191616   ;;  %vm797_vm6 = vcmask 257216  }
  0x37   : > { %s1418_s29 = smov 72   ;;  %s1419_s3 = smov 8  }
  0x38   : > { %452 = vmatpush.bf16.msra.mxu0 %v1058_v1  ;;  %s1420_s24 = smov 16   ;;  %s1421_s5 = smov 24  }
  0x39   : > { %532 = vmatpush.bf16.msra.mxu1 %v1060_v4  ;;  %s1055_s26 = sshll.u32 %s1397_s12, 3  ;;  %s413_s12 = scalar_lea.vmem [#allocation12], %s1014_s1 }
  0x3a   : > { %s1335_s1 = scalar_lea.hbm %s1729_s9, 16 }
  0x3b   : > { %1027 = vmatmul.msk.bf16.vlgmr.msra.gmra.mxu0 %vm441_vm0, %v420_v5 }
  0x3c   : > { %1036 = vmatmul.msk.bf16.vlgmr.msra.gmra.mxu1 %vm441_vm0, %v420_v5 }
  0xb8   : > { %v454_v7 = vpop.f32.mrf.mxu0 }
  0xb9   : > { %v455_v8 = vadd.f32 %v1170_v6, %v454_v7  ;;  %v534_v10 = vpop.f32.mrf.mxu1 }
  0xba   : > { %v535_v12 = vadd.f32 %v1171_v9, %v534_v10 }
  0xbb   : > { %v1616_v11 = vpack.c.bf16 %v455_v8, %v455_v8 }
  0xbc   : > { %v538_v14 = vpack.c.bf16 %v535_v12, %v535_v12 }
  0xbd   : > { %487 = vrot.lane.b32.xlu2 %v1616_v11, %s1412_s15  ;;  %467 = vrot.lane.b32.xlu1 %v1616_v11, %s1413_s21  ;;  %460 = vst.msk [vmem:[#allocation2] sm:$0xf] %vm459_vm1, %v1616_v11 }
  0xc0   : > { %v456_v13 = vpop.f32.mrf.mxu0 }
  0xc1   : > { %v536_v15 = vpop.f32.mrf.mxu1 }
  0xc4   : > { %v539_v16 = vld [vmem:[#allocation2] sm:$0xf] }
  0xc5   : > { %605 = vrot.lane.b32.xlu2 %v538_v14, %s1413_s21  ;;  %477 = vrot.lane.b32.xlu1 %v1616_v11, %s1414_s25  ;;  %v547_v17 = vsel %vm542_vm2, %v539_v16, 0 }
  0xc6   : > { %556 = vmatpush.bf16.xpose.msra.mxu2 %v547_v17 }
  0xcd   : > { %737 = vrot.lane.b32.xlu2 %v538_v14, %s1412_s15  ;;  %671 = vrot.lane.b32.xlu1 %v538_v14, %s1414_s25 }
  0xce   : > { %1037 = vmatmul.msk.bf16.vlgmr.msra.gmra.mxu2 %vm542_vm2, %v538_v14 }
  0xd5   : > { %472 = vrot.lane.b32.xlu2 %v1616_v11, %s1415_s27 }
  0xdd   : > { %482 = vrot.lane.b32.xlu2 %v1616_v11, %s1416_s23  ;;  %s889_s23 = scalar_lea.hbm %s1729_s9, %s1055_s26 }
 0x117   : > { %v488_v18 = vpop.permute.xlu2 %487 }
 0x118   : > { %491 = vst.msk [vmem:[#allocation2 + $0xc] sm:$0xf] %vm459_vm1, %v488_v18 }
 0x11f   : > { %v606_v19 = vpop.permute.xlu2 %605  ;;  %v734_v49 = vld [vmem:[#allocation2 + $0xc] sm:$0xf] }
 0x120   : > { %v743_v51 = vsel %vm542_vm2, %v734_v49, 0 }
 0x127   : > { %v738_v20 = vpop.permute.xlu2 %737 }
 0x12f   : > { %v473_v21 = vpop.permute.xlu2 %472  ;;  %v468_v22 = vpop.permute.xlu1 %467 }
 0x130   : > { %476 = vst.msk [vmem:[#allocation2 + $0x14] sm:$0xf] %vm459_vm1, %v473_v21 }
 0x131   : > { %471 = vst.msk [vmem:[#allocation2 + $0x4] sm:$0xf] %vm459_vm1, %v468_v22 }
 0x137   : > { %v483_v23 = vpop.permute.xlu2 %482  ;;  %v478_v24 = vpop.permute.xlu1 %477  ;;  %v603_v25 = vld [vmem:[#allocation2 + $0x14] sm:$0xf] }
 0x138   : > { %486 = vst.msk [vmem:[#allocation2 + $0x18] sm:$0xf] %vm459_vm1, %v483_v23  ;;  %v643_v26 = vsel %vm578_vm3, %v603_v25, 0  ;;  %v601_v44 = vld [vmem:[#allocation2 + $0x4] sm:$0xf] }
 0x139   : > { %481 = vst.msk [vmem:[#allocation2 + $0x8] sm:$0xf] %vm459_vm1, %v478_v24  ;;  %652 = vmatpush.bf16.msrb.mxu0 %v643_v26  ;;  %v611_v48 = vsel %vm542_vm2, %v601_v44, 0 }
 0x13f   : > { %v670_v27 = vld [vmem:[#allocation2 + $0x18] sm:$0xf]  ;;  %v672_v31 = vpop.permute.xlu1 %671 }
 0x140   : > { %v668_v28 = vld [vmem:[#allocation2 + $0x8] sm:$0xf]  ;;  %v709_v29 = vsel %vm578_vm3, %v670_v27, 0 }
 0x141   : > { %v677_v30 = vsel %vm542_vm2, %v668_v28, 0  ;;  %718 = vmatpush.bf16.msrb.mxu2 %v709_v29 }
 0x142   : > { %686 = vmatpush.bf16.xpose.msrb.mxu1 %v677_v30 }
 0x149   : > { %1041 = vmatmul.msk.bf16.vlgmr.msrb.gmra.mxu1 %vm542_vm2, %v672_v31 }
 0x151   : > { %v558_v32 = vpop.f32.mrf.mxu2 }
 0x152   : > { %v562_v33 = vsel %vm542_vm2, %v558_v32, -inf }
 0x153   : > { %563 = vmax.xlane.f32.xlu0 %v562_v33 }
 0x159   : > { %v560_v34 = vpop.f32.mrf.mxu2 }
 0x167   : > { %462 = vrot.lane.b32.xlu0 %v1616_v11, %s1417_s19 }
 0x1c6   : > { %v688_v35 = vpop.f32.mrf.mxu1  ;;  %v564_v37 = vpop.xlane.xlu0 %563 }
 0x1c7   : > { %v692_v36 = vsel %vm542_vm2, %v688_v35, -inf  ;;  %v565_v38 = vsub.f32 %v558_v32, %v564_v37 }
 0x1c8   : > { %693 = vmax.xlane.f32.xlu0 %v692_v36 }
 0x1c9   : > { %v566_v40 = vpack.c.bf16 %v565_v38, %v565_v38 }
 0x1cb   : > { %v567_v41 = vunpack.c.l.bf16 %v566_v40 }
 0x1cd   : > { %v568_v42 = vmul.f32 1.442695, %v567_v41 }
 0x1ce   : > { %v690_v39 = vpop.f32.mrf.mxu1 }
 0x1cf   : > { %1175 = vpow2.f32 %v568_v42 }
 0x1d5   : > { %v1176_v45 = vpop.eup %1175 }
 0x1d6   : > { %v1642_v50 = vpack.c.bf16 %v1176_v45, %v1176_v45 }
 0x1d8   : > { %v571_v27 = vunpack.c.l.bf16 %v1642_v50 }
 0x1d9   : > { %v463_v43 = vpop.permute.xlu0 %462 }
 0x1da   : > { %466 = vst.msk [vmem:[#allocation2 + $0x10] sm:$0xf] %vm459_vm1, %v463_v43  ;;  %v572_v30 = vsel %vm542_vm2, %v571_v27, 0.0 }
 0x1e1   : > { %v541_v46 = vld [vmem:[#allocation2 + $0x10] sm:$0xf] }
 0x1e2   : > { %v580_v47 = vsel %vm578_vm3, %v541_v46, 0 }
 0x1e3   : > { %589 = vmatpush.bf16.msra.mxu3 %v580_v47 }
 0x1e6   : > { %1038 = vmatmul.msk.bf16.vlgmr.msra.gmra.mxu3 %vm542_vm2, %v1642_v50 }
 0x1e7   : > { %620 = vmatpush.bf16.xpose.msrb.mxu3 %v611_v48 }
 0x1ef   : > { %752 = vmatpush.bf16.xpose.msra.mxu3 %v743_v51 }
 0x1f6   : > { %1039 = vmatmul.msk.bf16.vlgmr.msrb.gmra.mxu3 %vm542_vm2, %v606_v19 }
 0x206   : > { %1043 = vmatmul.msk.bf16.vlgmr.msra.gmra.mxu3 %vm542_vm2, %v738_v20 }
 0x23b   : > { %v694_v52 = vpop.xlane.xlu0 %693 }
 0x23c   : > { %v695_v53 = vsub.f32 %v688_v35, %v694_v52  ;;  %v1063_v52 = vld [vmem:[#allocation10 + $0x8] sm:$0xff] }
 0x23d   : > { %829 = vmatpush.bf16.msra.mxu1 %v1063_v52 }
 0x23e   : > { %v696_v54 = vpack.c.bf16 %v695_v53, %v695_v53  ;;  %v1062_v53 = vld [vmem:[#allocation10] sm:$0xff] }
 0x240   : > { %v697_v55 = vunpack.c.l.bf16 %v696_v54 }
 0x241   : > { %830 = vmatpush.bf16.msra.mxu1 %v1062_v53 }
 0x242   : > { %v698_v56 = vmul.f32 1.442695, %v697_v55 }
 0x244   : > { %1177 = vpow2.f32 %v698_v56 }
 0x24a   : > { %v1178_v57 = vpop.eup %1177 }
 0x24b   : > { %v700_v58 = vpack.c.bf16 %v1178_v57, %v1178_v57  ;;  %v1172_v57 = vld [vmem:[%s1726_s6] ss:$0 sm:$0xff] }
 0x24d   : > { %1042 = vmatmul.msk.bf16.vlgmr.msrb.gmra.mxu2 %vm542_vm2, %v700_v58  ;;  %v701_v21 = vunpack.c.l.bf16 %v700_v58 }
 0x24f   : > { %v702_v22 = vsel %vm542_vm2, %v701_v21, 0.0 }
 0x269   : > { %v1650_v59 = vpop.f32.mrf.mxu3 }
 0x271   : > { %v593_v60 = vpop.f32.mrf.mxu3 }
 0x279   : > { %v622_v61 = vpop.f32.mrf.mxu3 }
 0x27a   : > { %v626_v62 = vsel %vm542_vm2, %v622_v61, -inf }
 0x27b   : > { %627 = vmax.xlane.f32.xlu1 %v626_v62 }
 0x281   : > { %v624_v63 = vpop.f32.mrf.mxu3 }
 0x282   : > { %v1422_v63 = vmov 32.0  }
 0x289   : > { %v754_v0 = vpop.f32.mrf.mxu3 }
 0x28a   : > { %v758_v1 = vsel %vm542_vm2, %v754_v0, -inf }
 0x28b   : > { %759 = vmax.xlane.f32.xlu2 %v758_v1 }
 0x291   : > { %v756_v2 = vpop.f32.mrf.mxu3 }
 0x294   : > { %492 = vrot.lane.b32.xlu1 %v1616_v11, %s1418_s29 }
 0x2d0   : > { %v720_v4 = vpop.f32.mrf.mxu2 }
 0x2d8   : > { %v722_v5 = vpop.f32.mrf.mxu2 }
 0x2ee   : > { %v628_v6 = vpop.xlane.xlu1 %627 }
 0x2ef   : > { %v629_v7 = vsub.f32 %v622_v61, %v628_v6 }
 0x2f1   : > { %v630_v8 = vpack.c.bf16 %v629_v7, %v629_v7 }
 0x2f3   : > { %v631_v9 = vunpack.c.l.bf16 %v630_v8 }
 0x2f5   : > { %v632_v10 = vmul.f32 1.442695, %v631_v9 }
 0x2f7   : > { %1179 = vpow2.f32 %v632_v10 }
 0x2fd   : > { %v1180_v12 = vpop.eup %1179 }
 0x2fe   : > { %v634_v13 = vpack.c.bf16 %v1180_v12, %v1180_v12  ;;  %v760_v14 = vpop.xlane.xlu2 %759 }
 0x2ff   : > { %v761_v15 = vsub.f32 %v754_v0, %v760_v14 }
 0x300   : > { %1040 = vmatmul.msk.bf16.vlgmr.msrb.gmra.mxu0 %vm542_vm2, %v634_v13  ;;  %v635_v16 = vunpack.c.l.bf16 %v634_v13 }
 0x301   : > { %v762_v17 = vpack.c.bf16 %v761_v15, %v761_v15 }
 0x302   : > { %v636_v18 = vsel %vm542_vm2, %v635_v16, 0.0 }
 0x303   : > { %v763_v19 = vunpack.c.l.bf16 %v762_v17  ;;  %637 = vadd.xlane.f32.xlu0 %v636_v18 }
 0x305   : > { %v764_v11 = vmul.f32 1.442695, %v763_v19 }
 0x306   : > { %v493_v20 = vpop.permute.xlu1 %492 }
 0x307   : > { %1181 = vpow2.f32 %v764_v11  ;;  %496 = vst.msk [vmem:[#allocation2 + $0x1c] sm:$0xf] %vm459_vm1, %v493_v20  ;;  %v1173_v20 = vld [vmem:[%s1727_s7] ss:$0 sm:$0xff] }
 0x30b   : > { %703 = vadd.xlane.f32.xlu0 %v702_v22 }
 0x30d   : > { %v1182_v23 = vpop.eup %1181 }
 0x30e   : > { %v766_v24 = vpack.c.bf16 %v1182_v23, %v1182_v23  ;;  %v736_v25 = vld [vmem:[#allocation2 + $0x1c] sm:$0xf]  ;;  %v1174_v23 = vld [vmem:[%s1728_s8] ss:$0 sm:$0xff] }
 0x30f   : > { %v775_v26 = vsel %vm578_vm3, %v736_v25, 0 }
 0x310   : > { %784 = vmatpush.bf16.msra.mxu0 %v775_v26  ;;  %v767_v28 = vunpack.c.l.bf16 %v766_v24 }
 0x312   : > { %v768_v29 = vsel %vm542_vm2, %v767_v28, 0.0 }
 0x313   : > { %1044 = vmatmul.msk.bf16.vlgmr.msra.gmra.mxu0 %vm542_vm2, %v766_v24  ;;  %769 = vadd.xlane.f32.xlu2 %v768_v29 }
 0x314   : > { %573 = vadd.xlane.f32.xlu0 %v572_v30 }
 0x376   : > { %v638_v31 = vpop.xlane.xlu0 %637 }
 0x377   : > { %1183 = vrcp.f32 %v638_v31 }
 0x37d   : > { %v1184_v32 = vpop.eup %1183  ;;  %v654_v33 = vpop.f32.mrf.mxu0 }
 0x37e   : > { %v659_v34 = vmul.f32 %v1184_v32, %v654_v33  ;;  %v704_v35 = vpop.xlane.xlu0 %703 }
 0x37f   : > { %1185 = vrcp.f32 %v704_v35 }
 0x380   : > { %v660_v36 = vpack.c.bf16 %v659_v34, %v659_v34 }
 0x382   : > { %662 = vrot.lane.b32.xlu2 %v660_v36, %s1419_s3  ;;  %s891_s3 = sshll.u32 %s413_s12, 4  ;;  %s892_s3 = int_to_ptr.vmem [resolvable:$true] %s891_s3 }
 0x385   : > { %v1186_v37 = vpop.eup %1185  ;;  %v656_v38 = vpop.f32.mrf.mxu0 }
 0x386   : > { %v725_v39 = vmul.f32 %v1186_v37, %v720_v4  ;;  %v770_v40 = vpop.xlane.xlu2 %769 }
 0x387   : > { %v574_v41 = vpop.xlane.xlu0 %573 }
 0x388   : > { %1187 = vrcp.f32 %v574_v41  ;;  %v726_v42 = vpack.c.bf16 %v725_v39, %v725_v39 }
 0x389   : > { %1189 = vrcp.f32 %v770_v40 }
 0x38a   : > { %728 = vrot.lane.b32.xlu1 %v726_v42, %s1420_s24  ;;  %1191 = vrcp.f32 %v1422_v63  ;;  %s893_s24 = sshll.u32 %s889_s23, 4  ;;  %s894_s24 = int_to_ptr.hbm [resolvable:$true] %s893_s24 }
 0x38b   : > { %s1329_s16 = sshra.s32 %s894_s24, 4  ;;  %s1330_s16 = int_to_ptr.hbm [resolvable:$true] %s1329_s16 }
 0x38c   : > { %s1331_s20 = scalar_lea.hbm %s1330_s16, 8  ;;  %p1336_p10 = scmp.lt.s32.totalorder %s1330_s16, %s1729_s9 }
 0x38d   : > { %p1332_p1 = scmp.ne.s32.totalorder %s1330_s16, %s1331_s20  ;;  %p1337_p11 = scmp.lt.s32.totalorder %s1335_s1, %s1331_s20 }
 0x38e   : > { %v1188_v43 = vpop.eup %1187 }
 0x38f   : > { %v596_v44 = vmul.f32 %v1188_v43, %v1650_v59  ;;  %v1190_v45 = vpop.eup %1189  ;;  %p1333_p3 = pnand %p1332_p1, %p1564_p4  ;;  %p1338_p12 = por %p1337_p11, %p1336_p10 }
 0x390   : > { %v786_v46 = vpop.f32.mrf.mxu0  ;;  %v1192_v0 = vpop.eup %1191 }
 0x391   : > { %v597_v47 = vpack.c.bf16 %v596_v44, %v596_v44  ;;  %v791_v48 = vmul.f32 %v1190_v45, %v786_v46  ;;  %v841_v1 = vmul.f32 32.0, %v1192_v0  ;;  %vm845_vm7 = vweird.f32 %v1192_v0  ;;  %p1334_p9 = pneg %p1333_p3 }
 0x393   : > { %599 = vst.msk [vmem:[#allocation3] sm:$0xf] %vm459_vm1, %v597_v47  ;;  %v792_v49 = vpack.c.bf16 %v791_v48, %v791_v48  ;;  %v842_v2 = vsub.f32 1.0, %v841_v1  ;;  %p1339_p13 = pnand %p1338_p12, %p1334_p9 }
 0x395   : > { %794 = vrot.lane.b32.xlu0 %v792_v49, %s1421_s5  ;;  %v843_v4 = vmul.f32 %v1192_v0, %v842_v2  ;;  %s878_s5 = scalar_lea.sflag [#allocation6], %s1586_s22 }
 0x397   : > { %v844_v5 = vadd.f32 %v1192_v0, %v843_v4 }
 0x398   : > { %v788_v50 = vpop.f32.mrf.mxu0 }
 0x399   : > { %v846_v6 = vsel %vm845_vm7, %v1192_v0, %v844_v5 }
 0x3dc   : > { %v663_v51 = vpop.permute.xlu2 %662 }
 0x3dd   : > { %666 = vst.msk [vmem:[#allocation3] sm:$0xf] %vm665_vm4, %v663_v51 }
 0x3fc   : > { %v729_v54 = vpop.permute.xlu1 %728 }
 0x3fd   : > { %732 = vst.msk [vmem:[#allocation3] sm:$0xf] %vm731_vm5, %v729_v54 }
 0x407   : > { %v795_v55 = vpop.permute.xlu0 %794 }
 0x408   : > { %798 = vst.msk [vmem:[#allocation3] sm:$0xf] %vm797_vm6, %v795_v55 }
 0x40f   : > { %v799_v56 = vld [vmem:[#allocation3] sm:$0xf] }
 0x410   : > { %1053 = vmatmul.msk.bf16.vlgmr.msra.gmra.mxu1 %vm441_vm0, %v799_v56 }
 0x48d   : > { %v832_v58 = vpop.f32.mrf.mxu1 }
 0x48e   : > { %v833_v59 = vadd.f32 %v1172_v57, %v832_v58 }
 0x490   : > { %v836_v60 = vadd.f32 %v833_v59, %v1604_v3 }
 0x492   : > { %v837_v61 = vsel %vm441_vm0, %v836_v60, 0.0 }
 0x493   : > { %838 = vadd.xlane.f32.xlu1 %v837_v61 }
 0x495   : > { %v834_v62 = vpop.f32.mrf.mxu1 }
 0x506   : > { %v839_v7 = vpop.xlane.xlu1 %838 }
 0x507   : > { %v847_v8 = vmul.f32 %v846_v6, %v839_v7 }
 0x509   : > { %v848_v9 = vsub.f32 %v836_v60, %v847_v8 }
 0x50b   : > { %v849_v10 = vmul.f32 %v848_v9, %v848_v9 }
 0x50d   : > { %v850_v3 = vsel %vm441_vm0, %v849_v10, 0.0 }
 0x50e   : > { %851 = vadd.xlane.f32.xlu2 %v850_v3 }
 0x581   : > { %v852_v12 = vpop.xlane.xlu2 %851 }
 0x582   : > { %v853_v13 = vmul.f32 %v852_v12, %v846_v6 }
 0x584   : > { %v854_v14 = vadd.f32 1e-05, %v853_v13 }
 0x586   : > { %1193 = vrsqrt.f32 %v854_v14  ;;  %vm861_vm9 = vweird.f32 %v854_v14 }
 0x58c   : > { %v1194_v15 = vpop.eup %1193 }
 0x58d   : > { %v856_v16 = vmul.f32 %v1194_v15, %v854_v14  ;;  %vm862_vm8 = vweird.f32 %v1194_v15 }
 0x58e   : > { %vm863_vm10 = vmor %vm861_vm9, %vm862_vm8 }
 0x58f   : > { %v857_v17 = vmul.f32 %v1194_v15, %v856_v16 }
 0x591   : > { %v858_v18 = vmul.f32 0.5, %v857_v17 }
 0x593   : > { %v859_v19 = vsub.f32 1.5, %v858_v18 }
 0x595   : > { %v860_v11 = vmul.f32 %v1194_v15, %v859_v19 }
 0x597   : > { %v864_v21 = vsel %vm863_vm10, %v1194_v15, %v860_v11 }
 0x598   : > { %v865_v22 = vmul.f32 %v864_v21, %v848_v9 }
 0x59a   : > { %v870_v24 = vmul.f32 %v1173_v20, %v865_v22 }
 0x59c   : > { %v875_v25 = vadd.f32 %v1174_v23, %v870_v24 }
 0x59e   : > { %876 = vst.msk [vmem:[%s413_s12] sm:$0xff] %vm441_vm0, %v875_v25 }
 0x59f   : > { %1342 = shalt.err (!%p1339_p13)
}
 0x5a0   : > { %1078 = dma.vmem_to_hbm [thread:$0]  (%p1564_p4), %s892_s3, 128, %s894_s24, %s878_s5  }
 0x5a1 PF: > { %s905_s22 = sand.u32 1, %s1385_s30   ;;  %p1095_p0 = pnand %p1010_p6, %p1572_p7 }
 0x5a2   : > { %s906_s27 = scalar_lea.sflag [#allocation6], %s905_s22 }
 0x5a3   : > { %p1096_p2 = pneg %p1095_p0 }
 0x5a5   : > { %1380 = dma.done.wait (%p1096_p2), %s906_s27, 128  }
 0x5a6   : > { %1382 = vsyncadd (%p1096_p2), %s906_s27, 4294967168  ;;  %s27_s14 = sadd.s32 1, %s1405_s14   ;;  %s1747_s28 = sld [smem:[#allocation17_spill]] }
 0x5a7   : > { %p24_p5 = scmp.ge.s32.totalorder %s27_s14, 4   ;;  %s1748_s30 = smov %s1389_s10 }
 0x5a8   : > { %s1749_s10 = smov %s1393_s11  ;;  %s1750_s11 = smov %s1570_s17 }
 0x5a9   : > { %s1751_s12 = smov %s1401_s13  ;;  %26 = sbr.rel (!%p24_p5) target bundleno = 12 (0xc), region = 132 }
 0x5ac   : > { %s1752_s13 = smov %s1747_s28 }
 0x5ae   :  { %912 = vsyncpa [#allocation5], 1 }
 0x5af   :  { %914 = vsyncpa [#allocation5 + $0x1], 1 }
 0x5b0   :  { %915 = vsyncpa [#allocation8], 1 }
 0x5b1   :  { %916 = vsyncpa [#allocation11], 1 }
 0x5b2   :  { %917 = vsyncpa [#allocation6], 1 }
 0x5b3   :  { %919 = vsyncpa [#allocation6 + $0x1], 1 }

</bundles_post_ra>
